<compile_context>
chip_gen: v6e
topology: v6e:2x2x1
jax: 0.10.0
libtpu: 0.0.40
codegen_flags: <defaults>
</compile_context>

<pallas_src>
import jax
import jax.numpy as jnp
from jax import lax
from jax.experimental import pallas as pl
from jax.experimental.pallas import tpu as pltpu


def rnn_lstm_kernel(emb_ref,      # [T, BB, E]   embedded inputs (time-major, batch block)
                    w_ih_r_ref,   # [E, H]       RNN input->hidden (transposed)
                    w_hh_r_ref,   # [H, H]       RNN hidden->hidden (transposed)
                    b_r_ref,      # [1, H]       RNN combined bias (b_ih + b_hh), f32
                    w_ih_l_ref,   # [H, 4H]      LSTM input->gates (g-band pre-scaled by 2)
                    w_hh_l_ref,   # [H, 4H]      LSTM hidden->gates (g-band pre-scaled by 2)
                    b_l_ref,      # [1, 4H]      LSTM combined bias (g-band pre-scaled), f32
                    w_fc_ref,     # [H, Cp]      final linear weight (transposed, lane-padded)
                    b_fc_ref,     # [1, Cp]      final linear bias (lane-padded), f32
                    out_ref,      # [BB, Cp]     logits (lane-padded), f32
                    xproj_ref):   # [T, BB, H]   VMEM scratch for hoisted input projection
    T, BB, E = emb_ref.shape
    H = w_hh_r_ref.shape[0]
    mxu_dt = w_hh_r_ref.dtype          # matmul input dtype (f32 or bf16)

    # ---- Hoisted, carry-independent work (runs once, off the serial critical path) ----
    # RNN input projection as ONE [T*BB,E] @ [E,H] matmul, bias folded in, stored to VMEM
    # scratch so it is not a live vreg value across the whole time loop.
    # (The reshape only merges/splits the leading (sublane-major) dims; E/H stay in the
    # lane dim, so no lane relayout is required.)
    x_all = emb_ref[...].reshape(T * BB, E)
    xproj_ref[...] = (jnp.dot(x_all, w_ih_r_ref[...],
                              preferred_element_type=jnp.float32)
                      .reshape(T, BB, H) + b_r_ref[...])

    w_hh_r = w_hh_r_ref[...]
    w_ih_l = w_ih_l_ref[...]
    w_hh_l = w_hh_l_ref[...]
    b_l = jnp.broadcast_to(b_l_ref[...], (BB, 4 * H))      # hoisted bias broadcast

    # Lane mask picking the g-gate band -> one full-width select in the loop.
    lane = lax.broadcasted_iota(jnp.int32, (BB, 4 * H), 1)
    g_band = (lane >= 2 * H) & (lane < 3 * H)

    def step(t, carry):
        h_r, h_l, c_l = carry

        # Half of the LSTM gate matmul depends only on the previous carry h_l: issue it
        # first so it overlaps with the serial RNN matmul + tanh below (no concat).
        gates = jnp.dot(h_l.astype(mxu_dt), w_hh_l,
                        preferred_element_type=jnp.float32) + b_l

        # Elman RNN cell (tanh): the hidden->hidden matmul is the serial dependency.
        h_r = jnp.tanh(xproj_ref[t]
                       + jnp.dot(h_r.astype(mxu_dt), w_hh_r,
                                 preferred_element_type=jnp.float32))

        gates = gates + jnp.dot(h_r.astype(mxu_dt), w_ih_l,
                                preferred_element_type=jnp.float32)

        # Single EUP pass: sig = sigmoid(gates); the g-band pre-activation was pre-scaled
        # by 2 in the wrapper, so tanh(g) == 2*sig - 1 exactly.  Fix-up + select are VPU.
        sig = jax.nn.sigmoid(gates)
        act = jnp.where(g_band, 2.0 * sig - 1.0, sig)

        i_g = act[:, 0 * H:1 * H]
        f_g = act[:, 1 * H:2 * H]
        g_g = act[:, 2 * H:3 * H]
        o_g = act[:, 3 * H:4 * H]
        # TODO(synk): with H < 128 these slices leave lanes idle; a pltpu.roll-based
        # packed c/h update would keep the VPU full-width (secondary to the matmul path).

        c_l = f_g * c_l + i_g * g_g
        h_l = o_g * jnp.tanh(c_l)
        return (h_r, h_l, c_l)

    zeros = jnp.zeros((BB, H), jnp.float32)
    # Bounded unroll: enough overlap for the LLO scheduler without code size / vreg
    # pressure growing linearly in T.
    _, h_l, _ = lax.fori_loop(0, T, step, (zeros, zeros, zeros), unroll=min(T, 8))

    # dropout(p=0.2) is identity in eval mode; final fully-connected layer.
    # Cp is a multiple of 128 -> unmasked lane-dense store.
    out_ref[...] = (jnp.dot(h_l.astype(mxu_dt), w_fc_ref[...],
                            preferred_element_type=jnp.float32) + b_fc_ref[...])


def rnn_lstm_forward(tokens, params, *, block_b=None, mxu_dtype=jnp.float32):
    """tokens: int32 [B, T].  Returns float32 logits [B, num_classes]."""
    f32 = jnp.float32
    emb_table = params["embedding"]                     # [V, E] (row 0 zeroed = padding_idx)
    # Build the time-major layout directly in the gather: [T, B, E] (no extra transpose).
    emb_tm = jnp.take(emb_table, tokens.T, axis=0)
    T, B, E = emb_tm.shape
    H = params["w_hh_r"].shape[0]
    C = params["b_fc"].shape[-1]

    # Batch block: fill the MXU rows (256 on v6e/v7x; a harmless cap for v5e's 128-row
    # MXU).  For batch > 256 the grid gets >= 2 blocks -> both v7x TCs have work.
    B8 = -(-B // 8) * 8
    if block_b is None:
        block_b = min(B8, 256)
    block_b = max(8, -(-block_b // 8) * 8)
    Bp = -(-B // block_b) * block_b
    Cp = -(-C // 128) * 128

    emb_p = jnp.pad(emb_tm, ((0, 0), (0, Bp - B), (0, 0))).astype(mxu_dtype)

    # Single-sigmoid trick: tanh(x) = 2*sigmoid(2x) - 1, so pre-scale the g-gate band of
    # BOTH LSTM weight matrices and the fused bias by 2 (one-time, wrapper-side).
    gate_scale = jnp.ones((4 * H,), f32).at[2 * H:3 * H].set(2.0)
    w_ih_l = (params["w_ih_l"] * gate_scale).astype(mxu_dtype)
    w_hh_l = (params["w_hh_l"] * gate_scale).astype(mxu_dtype)
    b_l = (params["b_l"] * gate_scale).astype(f32)

    w_ih_r = params["w_ih_r"].astype(mxu_dtype)
    w_hh_r = params["w_hh_r"].astype(mxu_dtype)
    b_r = params["b_r"].astype(f32)
    w_fc_p = jnp.pad(params["w_fc"], ((0, 0), (0, Cp - C))).astype(mxu_dtype)
    b_fc_p = jnp.pad(params["b_fc"], ((0, 0), (0, Cp - C))).astype(f32)

    grid = (Bp // block_b,)
    # Weights use constant index_maps -> DMA'd once and stay VMEM-resident across blocks.
    # TODO(synk): for large T*block_b*E, stream T-chunks of emb from HBM (pl.ANY +
    # pltpu.make_async_copy / pltpu.emit_pipeline) and single-buffer the weight specs
    # (pipeline_mode=pl.Buffered(1)) so the same block_b fits v7x's 64 MiB VMEM.
    out_p = pl.pallas_call(
        rnn_lstm_kernel,
        out_shape=jax.ShapeDtypeStruct((Bp, Cp), jnp.float32),
        grid_spec=pltpu.PrefetchScalarGridSpec(
            num_scalar_prefetch=0,
            grid=grid,
            in_specs=[
                pl.BlockSpec((T, block_b, E), lambda i: (0, i, 0)),
                pl.BlockSpec((E, H), lambda i: (0, 0)),
                pl.BlockSpec((H, H), lambda i: (0, 0)),
                pl.BlockSpec((1, H), lambda i: (0, 0)),
                pl.BlockSpec((H, 4 * H), lambda i: (0, 0)),
                pl.BlockSpec((H, 4 * H), lambda i: (0, 0)),
                pl.BlockSpec((1, 4 * H), lambda i: (0, 0)),
                pl.BlockSpec((H, Cp), lambda i: (0, 0)),
                pl.BlockSpec((1, Cp), lambda i: (0, 0)),
            ],
            out_specs=pl.BlockSpec((block_b, Cp), lambda i: (i, 0)),
            scratch_shapes=[pltpu.VMEM((T, block_b, H), jnp.float32)],
        ),
        compiler_params=pltpu.CompilerParams(
            dimension_semantics=("parallel",),   # batch blocks -> both TCs on v7x
        ),
    )(emb_p, w_ih_r, w_hh_r, b_r, w_ih_l, w_hh_l, b_l, w_fc_p, b_fc_p)

    return out_p[:B, :C]


def jax_reference(tokens, params):
    """Pure-JAX reference with identical semantics (correctness check)."""
    embedded = jnp.take(params["embedding"], tokens, axis=0)   # [B, T, E]
    B, T, _ = embedded.shape
    H = params["w_hh_r"].shape[0]

    def step(carry, x_t):
        h_r, h_l, c_l = carry
        h_r = jnp.tanh(x_t @ params["w_ih_r"] + h_r @ params["w_hh_r"] + params["b_r"])
        gates = h_r @ params["w_ih_l"] + h_l @ params["w_hh_l"] + params["b_l"]
        i_g = jax.nn.sigmoid(gates[:, 0 * H:1 * H])
        f_g = jax.nn.sigmoid(gates[:, 1 * H:2 * H])
        g_g = jnp.tanh(gates[:, 2 * H:3 * H])
        o_g = jax.nn.sigmoid(gates[:, 3 * H:4 * H])
        c_l = f_g * c_l + i_g * g_g
        h_l = o_g * jnp.tanh(c_l)
        return (h_r, h_l, c_l), None

    zeros = jnp.zeros((B, H), jnp.float32)
    (_, h_l, _), _ = lax.scan(step, (zeros, zeros, zeros),
                              jnp.transpose(embedded, (1, 0, 2)))
    return h_l @ params["w_fc"] + params["b_fc"]


def make_params(key, vocab_size, embedding_dim, hidden_dim, num_classes):
    ks = jax.random.split(key, 12)
    s = 0.1

    emb = s * jax.random.normal(ks[0], (vocab_size, embedding_dim), jnp.float32)
    emb = emb.at[0].set(0.0)   # padding_idx=0

    # PyTorch stores weights as [out, in]; we pre-transpose to [in, out].
    w_ih_r = s * jax.random.normal(ks[1], (embedding_dim, hidden_dim), jnp.float32)
    w_hh_r = s * jax.random.normal(ks[2], (hidden_dim, hidden_dim), jnp.float32)
    b_r = (s * jax.random.normal(ks[3], (1, hidden_dim), jnp.float32)
           + s * jax.random.normal(ks[4], (1, hidden_dim), jnp.float32))

    w_ih_l = s * jax.random.normal(ks[5], (hidden_dim, 4 * hidden_dim), jnp.float32)
    w_hh_l = s * jax.random.normal(ks[6], (hidden_dim, 4 * hidden_dim), jnp.float32)
    b_l = (s * jax.random.normal(ks[7], (1, 4 * hidden_dim), jnp.float32)
           + s * jax.random.normal(ks[8], (1, 4 * hidden_dim), jnp.float32))

    w_fc = s * jax.random.normal(ks[9], (hidden_dim, num_classes), jnp.float32)
    b_fc = s * jax.random.normal(ks[10], (1, num_classes), jnp.float32)

    return dict(embedding=emb,
                w_ih_r=w_ih_r, w_hh_r=w_hh_r, b_r=b_r,
                w_ih_l=w_ih_l, w_hh_l=w_hh_l, b_l=b_l,
                w_fc=w_fc, b_fc=b_fc)


if __name__ == "__main__":
    vocab_size, embedding_dim, hidden_dim, num_classes = 50, 16, 32, 4
    batch, seq_len = 2, 8

    key = jax.random.PRNGKey(0)
    k_tok, k_par, k_tok2 = jax.random.split(key, 3)
    params = make_params(k_par, vocab_size, embedding_dim, hidden_dim, num_classes)
    tokens = jax.random.randint(k_tok, (batch, seq_len), 0, vocab_size, dtype=jnp.int32)

    ref = jax.block_until_ready(jax_reference(tokens, params))

    # f32 MXU path (exact semantics).
    out = jax.block_until_ready(rnn_lstm_forward(tokens, params))
    assert out.shape == (batch, num_classes)
    assert jnp.allclose(out, ref, atol=1e-4, rtol=1e-4), "f32 Pallas kernel mismatch vs JAX reference"

    # bf16 MXU path (native MXU dtype on v6e/v7x); carries / gate math stay f32.
    out_bf16 = jax.block_until_ready(
        rnn_lstm_forward(tokens, params, mxu_dtype=jnp.bfloat16))
    assert jnp.allclose(out_bf16, ref, atol=5e-2, rtol=5e-2), "bf16 Pallas kernel mismatch vs JAX reference"

    # Multi-block batch-parallel grid path (grid > 1) with a larger batch.
    tokens_big = jax.random.randint(k_tok2, (20, seq_len), 0, vocab_size, dtype=jnp.int32)
    ref_big = jax.block_until_ready(jax_reference(tokens_big, params))
    out_big = jax.block_until_ready(rnn_lstm_forward(tokens_big, params, block_b=8))
    assert jnp.allclose(out_big, ref_big, atol=1e-4, rtol=1e-4), "multi-block Pallas kernel mismatch"

    print("KERNEL_OK")
</pallas_src>

<mosaic_0001>
module attributes {stable_mosaic.version = 11 : i64} {
  func.func @rnn_lstm_kernel(%arg0: i32, %arg1: memref<8x8x16xf32, #tpu.memory_space<vmem>>, %arg2: memref<16x32xf32, #tpu.memory_space<vmem>>, %arg3: memref<32x32xf32, #tpu.memory_space<vmem>>, %arg4: memref<1x32xf32, #tpu.memory_space<vmem>>, %arg5: memref<32x128xf32, #tpu.memory_space<vmem>>, %arg6: memref<32x128xf32, #tpu.memory_space<vmem>>, %arg7: memref<1x128xf32, #tpu.memory_space<vmem>>, %arg8: memref<32x128xf32, #tpu.memory_space<vmem>>, %arg9: memref<1x128xf32, #tpu.memory_space<vmem>>, %arg10: memref<8x128xf32, #tpu.memory_space<vmem>>, %arg11: memref<8x8x32xf32, #tpu.memory_space<vmem>>) attributes {dimension_semantics = [#tpu.dimension_semantics<parallel>], iteration_bounds = array<i64: 1>, scalar_prefetch = 0 : i64, scratch_operands = 1 : i64, tpu.core_type = #tpu.core_type<tc>, window_params = [{transform_indices = @transform_0, window_bounds = array<i64: 8, 8, 16>}, {pipeline_mode = #tpu.pipeline_mode<synchronous>, transform_indices = @transform_1, window_bounds = array<i64: 16, 32>}, {pipeline_mode = #tpu.pipeline_mode<synchronous>, transform_indices = @transform_2, window_bounds = array<i64: 32, 32>}, {pipeline_mode = #tpu.pipeline_mode<synchronous>, transform_indices = @transform_3, window_bounds = array<i64: 1, 32>}, {pipeline_mode = #tpu.pipeline_mode<synchronous>, transform_indices = @transform_4, window_bounds = array<i64: 32, 128>}, {pipeline_mode = #tpu.pipeline_mode<synchronous>, transform_indices = @transform_5, window_bounds = array<i64: 32, 128>}, {pipeline_mode = #tpu.pipeline_mode<synchronous>, transform_indices = @transform_6, window_bounds = array<i64: 1, 128>}, {pipeline_mode = #tpu.pipeline_mode<synchronous>, transform_indices = @transform_7, window_bounds = array<i64: 32, 128>}, {pipeline_mode = #tpu.pipeline_mode<synchronous>, transform_indices = @transform_8, window_bounds = array<i64: 1, 128>}, {transform_indices = @transform_9, window_bounds = array<i64: 8, 128>}]} {
    %c0 = arith.constant 0 : index
    %c0_0 = arith.constant 0 : index
    %c0_1 = arith.constant 0 : index
    %0 = vector.load %arg1[%c0, %c0_0, %c0_1] : memref<8x8x16xf32, #tpu.memory_space<vmem>>, vector<8x8x16xf32>
    %1 = vector.shape_cast %0 : vector<8x8x16xf32> to vector<64x16xf32>
    %c0_2 = arith.constant 0 : index
    %c0_3 = arith.constant 0 : index
    %2 = vector.load %arg2[%c0_2, %c0_3] : memref<16x32xf32, #tpu.memory_space<vmem>>, vector<16x32xf32>
    %cst = arith.constant dense<0.000000e+00> : vector<64x32xf32>
    %3 = tpu.matmul %1, %2, %cst {dimension_numbers = #tpu.dot_dimension_numbers<[1], [0], [0], [1], [0, 0, 1, 1], [], []>} : vector<64x16xf32>, vector<16x32xf32>, vector<64x32xf32> -> vector<64x32xf32>
    %4 = vector.shape_cast %3 : vector<64x32xf32> to vector<8x8x32xf32>
    %c0_4 = arith.constant 0 : index
    %c0_5 = arith.constant 0 : index
    %5 = vector.load %arg4[%c0_4, %c0_5] : memref<1x32xf32, #tpu.memory_space<vmem>>, vector<1x32xf32>
    %6 = vector.shape_cast %5 : vector<1x32xf32> to vector<1x1x32xf32>
    %7 = vector.broadcast %6 : vector<1x1x32xf32> to vector<8x8x32xf32>
    %8 = arith.addf %4, %7 : vector<8x8x32xf32>
    %c0_6 = arith.constant 0 : index
    %c0_7 = arith.constant 0 : index
    %c0_8 = arith.constant 0 : index
    %9 = vector.load %arg11[%c0_6, %c0_7, %c0_8] : memref<8x8x32xf32, #tpu.memory_space<vmem>>, vector<8x8x32xf32>
    tpu.vector_store %arg11[%c0_6, %c0_7, %c0_8], %8 {strides = array<i32>} : memref<8x8x32xf32, #tpu.memory_space<vmem>>, vector<8x8x32xf32>,
    %c0_9 = arith.constant 0 : index
    %c0_10 = arith.constant 0 : index
    %10 = vector.load %arg3[%c0_9, %c0_10] : memref<32x32xf32, #tpu.memory_space<vmem>>, vector<32x32xf32>
    %c0_11 = arith.constant 0 : index
    %c0_12 = arith.constant 0 : index
    %11 = vector.load %arg5[%c0_11, %c0_12] : memref<32x128xf32, #tpu.memory_space<vmem>>, vector<32x128xf32>
    %c0_13 = arith.constant 0 : index
    %c0_14 = arith.constant 0 : index
    %12 = vector.load %arg6[%c0_13, %c0_14] : memref<32x128xf32, #tpu.memory_space<vmem>>, vector<32x128xf32>
    %c0_15 = arith.constant 0 : index
    %c0_16 = arith.constant 0 : index
    %13 = vector.load %arg7[%c0_15, %c0_16] : memref<1x128xf32, #tpu.memory_space<vmem>>, vector<1x128xf32>
    %14 = vector.shape_cast %13 : vector<1x128xf32> to vector<1x128xf32>
    %15 = vector.broadcast %14 : vector<1x128xf32> to vector<8x128xf32>
    %16 = tpu.iota {dimensions = array<i32: 1>} : vector<8x128xi32>
    %c64_i32 = arith.constant 64 : i32
    %17 = vector.broadcast %c64_i32 : i32 to vector<8x128xi32>
    %18 = arith.cmpi sge, %16, %17 : vector<8x128xi32>
    %c96_i32 = arith.constant 96 : i32
    %19 = vector.broadcast %c96_i32 : i32 to vector<8x128xi32>
    %20 = arith.cmpi slt, %16, %19 : vector<8x128xi32>
    %21 = arith.andi %18, %20 : vector<8x128xi1>
    %cst_17 = arith.constant 0.000000e+00 : f32
    %22 = vector.broadcast %cst_17 : f32 to vector<8x32xf32>
    %c0_i32 = arith.constant 0 : i32
    %cst_18 = arith.constant dense<0.000000e+00> : vector<8x128xf32>
    %23 = tpu.matmul %22, %12, %cst_18 {dimension_numbers = #tpu.dot_dimension_numbers<[1], [0], [0], [1], [0, 0, 1, 1], [], []>} : vector<8x32xf32>, vector<32x128xf32>, vector<8x128xf32> -> vector<8x128xf32>
    %24 = arith.addf %23, %15 : vector<8x128xf32>
    %25 = arith.index_cast %c0_i32 : i32 to index
    %c0_19 = arith.constant 0 : index
    %c0_20 = arith.constant 0 : index
    %26 = vector.load %arg11[%25, %c0_19, %c0_20] : memref<8x8x32xf32, #tpu.memory_space<vmem>>, vector<1x8x32xf32>
    %27 = vector.shape_cast %26 : vector<1x8x32xf32> to vector<8x32xf32>
    %cst_21 = arith.constant dense<0.000000e+00> : vector<8x32xf32>
    %28 = tpu.matmul %22, %10, %cst_21 {dimension_numbers = #tpu.dot_dimension_numbers<[1], [0], [0], [1], [0, 0, 1, 1], [], []>} : vector<8x32xf32>, vector<32x32xf32>, vector<8x32xf32> -> vector<8x32xf32>
    %29 = arith.addf %27, %28 : vector<8x32xf32>
    %30 = math.tanh %29 : vector<8x32xf32>
    %cst_22 = arith.constant dense<0.000000e+00> : vector<8x128xf32>
    %31 = tpu.matmul %30, %11, %cst_22 {dimension_numbers = #tpu.dot_dimension_numbers<[1], [0], [0], [1], [0, 0, 1, 1], [], []>} : vector<8x32xf32>, vector<32x128xf32>, vector<8x128xf32> -> vector<8x128xf32>
    %32 = arith.addf %24, %31 : vector<8x128xf32>
    %33 = arith.negf %32 : vector<8x128xf32>
    %34 = math.exp %33 : vector<8x128xf32>
    %cst_23 = arith.constant 1.000000e+00 : f32
    %35 = vector.broadcast %cst_23 : f32 to vector<8x128xf32>
    %36 = arith.addf %35, %34 : vector<8x128xf32>
    %37 = arith.divf %35, %36 : vector<8x128xf32>
    %cst_24 = arith.constant 2.000000e+00 : f32
    %38 = vector.broadcast %cst_24 : f32 to vector<8x128xf32>
    %39 = arith.mulf %38, %37 : vector<8x128xf32>
    %cst_25 = arith.constant 1.000000e+00 : f32
    %40 = vector.broadcast %cst_25 : f32 to vector<8x128xf32>
    %41 = arith.subf %39, %40 : vector<8x128xf32>
    %42 = arith.select %21, %41, %37 : vector<8x128xi1>, vector<8x128xf32>
    %43 = vector.extract_strided_slice %42 {offsets = [0, 0], sizes = [8, 32], strides = [1, 1]} : vector<8x128xf32> to vector<8x32xf32>
    %44 = vector.extract_strided_slice %42 {offsets = [0, 32], sizes = [8, 32], strides = [1, 1]} : vector<8x128xf32> to vector<8x32xf32>
    %45 = vector.extract_strided_slice %42 {offsets = [0, 64], sizes = [8, 32], strides = [1, 1]} : vector<8x128xf32> to vector<8x32xf32>
    %46 = vector.extract_strided_slice %42 {offsets = [0, 96], sizes = [8, 32], strides = [1, 1]} : vector<8x128xf32> to vector<8x32xf32>
    %47 = arith.mulf %44, %22 : vector<8x32xf32>
    %48 = arith.mulf %43, %45 : vector<8x32xf32>
    %49 = arith.addf %47, %48 : vector<8x32xf32>
    %50 = math.tanh %49 : vector<8x32xf32>
    %51 = arith.mulf %46, %50 : vector<8x32xf32>
    %c1_i32 = arith.constant 1 : i32
    %cst_26 = arith.constant dense<0.000000e+00> : vector<8x128xf32>
    %52 = tpu.matmul %51, %12, %cst_26 {dimension_numbers = #tpu.dot_dimension_numbers<[1], [0], [0], [1], [0, 0, 1, 1], [], []>} : vector<8x32xf32>, vector<32x128xf32>, vector<8x128xf32> -> vector<8x128xf32>
    %53 = arith.addf %52, %15 : vector<8x128xf32>
    %54 = arith.index_cast %c1_i32 : i32 to index
    %c0_27 = arith.constant 0 : index
    %c0_28 = arith.constant 0 : index
    %55 = vector.load %arg11[%54, %c0_27, %c0_28] : memref<8x8x32xf32, #tpu.memory_space<vmem>>, vector<1x8x32xf32>
    %56 = vector.shape_cast %55 : vector<1x8x32xf32> to vector<8x32xf32>
    %cst_29 = arith.constant dense<0.000000e+00> : vector<8x32xf32>
    %57 = tpu.matmul %30, %10, %cst_29 {dimension_numbers = #tpu.dot_dimension_numbers<[1], [0], [0], [1], [0, 0, 1, 1], [], []>} : vector<8x32xf32>, vector<32x32xf32>, vector<8x32xf32> -> vector<8x32xf32>
    %58 = arith.addf %56, %57 : vector<8x32xf32>
    %59 = math.tanh %58 : vector<8x32xf32>
    %cst_30 = arith.constant dense<0.000000e+00> : vector<8x128xf32>
    %60 = tpu.matmul %59, %11, %cst_30 {dimension_numbers = #tpu.dot_dimension_numbers<[1], [0], [0], [1], [0, 0, 1, 1], [], []>} : vector<8x32xf32>, vector<32x128xf32>, vector<8x128xf32> -> vector<8x128xf32>
    %61 = arith.addf %53, %60 : vector<8x128xf32>
    %62 = arith.negf %61 : vector<8x128xf32>
    %63 = math.exp %62 : vector<8x128xf32>
    %cst_31 = arith.constant 1.000000e+00 : f32
    %64 = vector.broadcast %cst_31 : f32 to vector<8x128xf32>
    %65 = arith.addf %64, %63 : vector<8x128xf32>
    %66 = arith.divf %64, %65 : vector<8x128xf32>
    %cst_32 = arith.constant 2.000000e+00 : f32
    %67 = vector.broadcast %cst_32 : f32 to vector<8x128xf32>
    %68 = arith.mulf %67, %66 : vector<8x128xf32>
    %cst_33 = arith.constant 1.000000e+00 : f32
    %69 = vector.broadcast %cst_33 : f32 to vector<8x128xf32>
    %70 = arith.subf %68, %69 : vector<8x128xf32>
    %71 = arith.select %21, %70, %66 : vector<8x128xi1>, vector<8x128xf32>
    %72 = vector.extract_strided_slice %71 {offsets = [0, 0], sizes = [8, 32], strides = [1, 1]} : vector<8x128xf32> to vector<8x32xf32>
    %73 = vector.extract_strided_slice %71 {offsets = [0, 32], sizes = [8, 32], strides = [1, 1]} : vector<8x128xf32> to vector<8x32xf32>
    %74 = vector.extract_strided_slice %71 {offsets = [0, 64], sizes = [8, 32], strides = [1, 1]} : vector<8x128xf32> to vector<8x32xf32>
    %75 = vector.extract_strided_slice %71 {offsets = [0, 96], sizes = [8, 32], strides = [1, 1]} : vector<8x128xf32> to vector<8x32xf32>
    %76 = arith.mulf %73, %49 : vector<8x32xf32>
    %77 = arith.mulf %72, %74 : vector<8x32xf32>
    %78 = arith.addf %76, %77 : vector<8x32xf32>
    %79 = math.tanh %78 : vector<8x32xf32>
    %80 = arith.mulf %75, %79 : vector<8x32xf32>
    %c2_i32 = arith.constant 2 : i32
    %cst_34 = arith.constant dense<0.000000e+00> : vector<8x128xf32>
    %81 = tpu.matmul %80, %12, %cst_34 {dimension_numbers = #tpu.dot_dimension_numbers<[1], [0], [0], [1], [0, 0, 1, 1], [], []>} : vector<8x32xf32>, vector<32x128xf32>, vector<8x128xf32> -> vector<8x128xf32>
    %82 = arith.addf %81, %15 : vector<8x128xf32>
    %83 = arith.index_cast %c2_i32 : i32 to index
    %c0_35 = arith.constant 0 : index
    %c0_36 = arith.constant 0 : index
    %84 = vector.load %arg11[%83, %c0_35, %c0_36] : memref<8x8x32xf32, #tpu.memory_space<vmem>>, vector<1x8x32xf32>
    %85 = vector.shape_cast %84 : vector<1x8x32xf32> to vector<8x32xf32>
    %cst_37 = arith.constant dense<0.000000e+00> : vector<8x32xf32>
    %86 = tpu.matmul %59, %10, %cst_37 {dimension_numbers = #tpu.dot_dimension_numbers<[1], [0], [0], [1], [0, 0, 1, 1], [], []>} : vector<8x32xf32>, vector<32x32xf32>, vector<8x32xf32> -> vector<8x32xf32>
    %87 = arith.addf %85, %86 : vector<8x32xf32>
    %88 = math.tanh %87 : vector<8x32xf32>
    %cst_38 = arith.constant dense<0.000000e+00> : vector<8x128xf32>
    %89 = tpu.matmul %88, %11, %cst_38 {dimension_numbers = #tpu.dot_dimension_numbers<[1], [0], [0], [1], [0, 0, 1, 1], [], []>} : vector<8x32xf32>, vector<32x128xf32>, vector<8x128xf32> -> vector<8x128xf32>
    %90 = arith.addf %82, %89 : vector<8x128xf32>
    %91 = arith.negf %90 : vector<8x128xf32>
    %92 = math.exp %91 : vector<8x128xf32>
    %cst_39 = arith.constant 1.000000e+00 : f32
    %93 = vector.broadcast %cst_39 : f32 to vector<8x128xf32>
    %94 = arith.addf %93, %92 : vector<8x128xf32>
    %95 = arith.divf %93, %94 : vector<8x128xf32>
    %cst_40 = arith.constant 2.000000e+00 : f32
    %96 = vector.broadcast %cst_40 : f32 to vector<8x128xf32>
    %97 = arith.mulf %96, %95 : vector<8x128xf32>
    %cst_41 = arith.constant 1.000000e+00 : f32
    %98 = vector.broadcast %cst_41 : f32 to vector<8x128xf32>
    %99 = arith.subf %97, %98 : vector<8x128xf32>
    %100 = arith.select %21, %99, %95 : vector<8x128xi1>, vector<8x128xf32>
    %101 = vector.extract_strided_slice %100 {offsets = [0, 0], sizes = [8, 32], strides = [1, 1]} : vector<8x128xf32> to vector<8x32xf32>
    %102 = vector.extract_strided_slice %100 {offsets = [0, 32], sizes = [8, 32], strides = [1, 1]} : vector<8x128xf32> to vector<8x32xf32>
    %103 = vector.extract_strided_slice %100 {offsets = [0, 64], sizes = [8, 32], strides = [1, 1]} : vector<8x128xf32> to vector<8x32xf32>
    %104 = vector.extract_strided_slice %100 {offsets = [0, 96], sizes = [8, 32], strides = [1, 1]} : vector<8x128xf32> to vector<8x32xf32>
    %105 = arith.mulf %102, %78 : vector<8x32xf32>
    %106 = arith.mulf %101, %103 : vector<8x32xf32>
    %107 = arith.addf %105, %106 : vector<8x32xf32>
    %108 = math.tanh %107 : vector<8x32xf32>
    %109 = arith.mulf %104, %108 : vector<8x32xf32>
    %c3_i32 = arith.constant 3 : i32
    %cst_42 = arith.constant dense<0.000000e+00> : vector<8x128xf32>
    %110 = tpu.matmul %109, %12, %cst_42 {dimension_numbers = #tpu.dot_dimension_numbers<[1], [0], [0], [1], [0, 0, 1, 1], [], []>} : vector<8x32xf32>, vector<32x128xf32>, vector<8x128xf32> -> vector<8x128xf32>
    %111 = arith.addf %110, %15 : vector<8x128xf32>
    %112 = arith.index_cast %c3_i32 : i32 to index
    %c0_43 = arith.constant 0 : index
    %c0_44 = arith.constant 0 : index
    %113 = vector.load %arg11[%112, %c0_43, %c0_44] : memref<8x8x32xf32, #tpu.memory_space<vmem>>, vector<1x8x32xf32>
    %114 = vector.shape_cast %113 : vector<1x8x32xf32> to vector<8x32xf32>
    %cst_45 = arith.constant dense<0.000000e+00> : vector<8x32xf32>
    %115 = tpu.matmul %88, %10, %cst_45 {dimension_numbers = #tpu.dot_dimension_numbers<[1], [0], [0], [1], [0, 0, 1, 1], [], []>} : vector<8x32xf32>, vector<32x32xf32>, vector<8x32xf32> -> vector<8x32xf32>
    %116 = arith.addf %114, %115 : vector<8x32xf32>
    %117 = math.tanh %116 : vector<8x32xf32>
    %cst_46 = arith.constant dense<0.000000e+00> : vector<8x128xf32>
    %118 = tpu.matmul %117, %11, %cst_46 {dimension_numbers = #tpu.dot_dimension_numbers<[1], [0], [0], [1], [0, 0, 1, 1], [], []>} : vector<8x32xf32>, vector<32x128xf32>, vector<8x128xf32> -> vector<8x128xf32>
    %119 = arith.addf %111, %118 : vector<8x128xf32>
    %120 = arith.negf %119 : vector<8x128xf32>
    %121 = math.exp %120 : vector<8x128xf32>
    %cst_47 = arith.constant 1.000000e+00 : f32
    %122 = vector.broadcast %cst_47 : f32 to vector<8x128xf32>
    %123 = arith.addf %122, %121 : vector<8x128xf32>
    %124 = arith.divf %122, %123 : vector<8x128xf32>
    %cst_48 = arith.constant 2.000000e+00 : f32
    %125 = vector.broadcast %cst_48 : f32 to vector<8x128xf32>
    %126 = arith.mulf %125, %124 : vector<8x128xf32>
    %cst_49 = arith.constant 1.000000e+00 : f32
    %127 = vector.broadcast %cst_49 : f32 to vector<8x128xf32>
    %128 = arith.subf %126, %127 : vector<8x128xf32>
    %129 = arith.select %21, %128, %124 : vector<8x128xi1>, vector<8x128xf32>
    %130 = vector.extract_strided_slice %129 {offsets = [0, 0], sizes = [8, 32], strides = [1, 1]} : vector<8x128xf32> to vector<8x32xf32>
    %131 = vector.extract_strided_slice %129 {offsets = [0, 32], sizes = [8, 32], strides = [1, 1]} : vector<8x128xf32> to vector<8x32xf32>
    %132 = vector.extract_strided_slice %129 {offsets = [0, 64], sizes = [8, 32], strides = [1, 1]} : vector<8x128xf32> to vector<8x32xf32>
    %133 = vector.extract_strided_slice %129 {offsets = [0, 96], sizes = [8, 32], strides = [1, 1]} : vector<8x128xf32> to vector<8x32xf32>
    %134 = arith.mulf %131, %107 : vector<8x32xf32>
    %135 = arith.mulf %130, %132 : vector<8x32xf32>
    %136 = arith.addf %134, %135 : vector<8x32xf32>
    %137 = math.tanh %136 : vector<8x32xf32>
    %138 = arith.mulf %133, %137 : vector<8x32xf32>
    %c4_i32 = arith.constant 4 : i32
    %cst_50 = arith.constant dense<0.000000e+00> : vector<8x128xf32>
    %139 = tpu.matmul %138, %12, %cst_50 {dimension_numbers = #tpu.dot_dimension_numbers<[1], [0], [0], [1], [0, 0, 1, 1], [], []>} : vector<8x32xf32>, vector<32x128xf32>, vector<8x128xf32> -> vector<8x128xf32>
    %140 = arith.addf %139, %15 : vector<8x128xf32>
    %141 = arith.index_cast %c4_i32 : i32 to index
    %c0_51 = arith.constant 0 : index
    %c0_52 = arith.constant 0 : index
    %142 = vector.load %arg11[%141, %c0_51, %c0_52] : memref<8x8x32xf32, #tpu.memory_space<vmem>>, vector<1x8x32xf32>
    %143 = vector.shape_cast %142 : vector<1x8x32xf32> to vector<8x32xf32>
    %cst_53 = arith.constant dense<0.000000e+00> : vector<8x32xf32>
    %144 = tpu.matmul %117, %10, %cst_53 {dimension_numbers = #tpu.dot_dimension_numbers<[1], [0], [0], [1], [0, 0, 1, 1], [], []>} : vector<8x32xf32>, vector<32x32xf32>, vector<8x32xf32> -> vector<8x32xf32>
    %145 = arith.addf %143, %144 : vector<8x32xf32>
    %146 = math.tanh %145 : vector<8x32xf32>
    %cst_54 = arith.constant dense<0.000000e+00> : vector<8x128xf32>
    %147 = tpu.matmul %146, %11, %cst_54 {dimension_numbers = #tpu.dot_dimension_numbers<[1], [0], [0], [1], [0, 0, 1, 1], [], []>} : vector<8x32xf32>, vector<32x128xf32>, vector<8x128xf32> -> vector<8x128xf32>
    %148 = arith.addf %140, %147 : vector<8x128xf32>
    %149 = arith.negf %148 : vector<8x128xf32>
    %150 = math.exp %149 : vector<8x128xf32>
    %cst_55 = arith.constant 1.000000e+00 : f32
    %151 = vector.broadcast %cst_55 : f32 to vector<8x128xf32>
    %152 = arith.addf %151, %150 : vector<8x128xf32>
    %153 = arith.divf %151, %152 : vector<8x128xf32>
    %cst_56 = arith.constant 2.000000e+00 : f32
    %154 = vector.broadcast %cst_56 : f32 to vector<8x128xf32>
    %155 = arith.mulf %154, %153 : vector<8x128xf32>
    %cst_57 = arith.constant 1.000000e+00 : f32
    %156 = vector.broadcast %cst_57 : f32 to vector<8x128xf32>
    %157 = arith.subf %155, %156 : vector<8x128xf32>
    %158 = arith.select %21, %157, %153 : vector<8x128xi1>, vector<8x128xf32>
    %159 = vector.extract_strided_slice %158 {offsets = [0, 0], sizes = [8, 32], strides = [1, 1]} : vector<8x128xf32> to vector<8x32xf32>
    %160 = vector.extract_strided_slice %158 {offsets = [0, 32], sizes = [8, 32], strides = [1, 1]} : vector<8x128xf32> to vector<8x32xf32>
    %161 = vector.extract_strided_slice %158 {offsets = [0, 64], sizes = [8, 32], strides = [1, 1]} : vector<8x128xf32> to vector<8x32xf32>
    %162 = vector.extract_strided_slice %158 {offsets = [0, 96], sizes = [8, 32], strides = [1, 1]} : vector<8x128xf32> to vector<8x32xf32>
    %163 = arith.mulf %160, %136 : vector<8x32xf32>
    %164 = arith.mulf %159, %161 : vector<8x32xf32>
    %165 = arith.addf %163, %164 : vector<8x32xf32>
    %166 = math.tanh %165 : vector<8x32xf32>
    %167 = arith.mulf %162, %166 : vector<8x32xf32>
    %c5_i32 = arith.constant 5 : i32
    %cst_58 = arith.constant dense<0.000000e+00> : vector<8x128xf32>
    %168 = tpu.matmul %167, %12, %cst_58 {dimension_numbers = #tpu.dot_dimension_numbers<[1], [0], [0], [1], [0, 0, 1, 1], [], []>} : vector<8x32xf32>, vector<32x128xf32>, vector<8x128xf32> -> vector<8x128xf32>
    %169 = arith.addf %168, %15 : vector<8x128xf32>
    %170 = arith.index_cast %c5_i32 : i32 to index
    %c0_59 = arith.constant 0 : index
    %c0_60 = arith.constant 0 : index
    %171 = vector.load %arg11[%170, %c0_59, %c0_60] : memref<8x8x32xf32, #tpu.memory_space<vmem>>, vector<1x8x32xf32>
    %172 = vector.shape_cast %171 : vector<1x8x32xf32> to vector<8x32xf32>
    %cst_61 = arith.constant dense<0.000000e+00> : vector<8x32xf32>
    %173 = tpu.matmul %146, %10, %cst_61 {dimension_numbers = #tpu.dot_dimension_numbers<[1], [0], [0], [1], [0, 0, 1, 1], [], []>} : vector<8x32xf32>, vector<32x32xf32>, vector<8x32xf32> -> vector<8x32xf32>
    %174 = arith.addf %172, %173 : vector<8x32xf32>
    %175 = math.tanh %174 : vector<8x32xf32>
    %cst_62 = arith.constant dense<0.000000e+00> : vector<8x128xf32>
    %176 = tpu.matmul %175, %11, %cst_62 {dimension_numbers = #tpu.dot_dimension_numbers<[1], [0], [0], [1], [0, 0, 1, 1], [], []>} : vector<8x32xf32>, vector<32x128xf32>, vector<8x128xf32> -> vector<8x128xf32>
    %177 = arith.addf %169, %176 : vector<8x128xf32>
    %178 = arith.negf %177 : vector<8x128xf32>
    %179 = math.exp %178 : vector<8x128xf32>
    %cst_63 = arith.constant 1.000000e+00 : f32
    %180 = vector.broadcast %cst_63 : f32 to vector<8x128xf32>
    %181 = arith.addf %180, %179 : vector<8x128xf32>
    %182 = arith.divf %180, %181 : vector<8x128xf32>
    %cst_64 = arith.constant 2.000000e+00 : f32
    %183 = vector.broadcast %cst_64 : f32 to vector<8x128xf32>
    %184 = arith.mulf %183, %182 : vector<8x128xf32>
    %cst_65 = arith.constant 1.000000e+00 : f32
    %185 = vector.broadcast %cst_65 : f32 to vector<8x128xf32>
    %186 = arith.subf %184, %185 : vector<8x128xf32>
    %187 = arith.select %21, %186, %182 : vector<8x128xi1>, vector<8x128xf32>
    %188 = vector.extract_strided_slice %187 {offsets = [0, 0], sizes = [8, 32], strides = [1, 1]} : vector<8x128xf32> to vector<8x32xf32>
    %189 = vector.extract_strided_slice %187 {offsets = [0, 32], sizes = [8, 32], strides = [1, 1]} : vector<8x128xf32> to vector<8x32xf32>
    %190 = vector.extract_strided_slice %187 {offsets = [0, 64], sizes = [8, 32], strides = [1, 1]} : vector<8x128xf32> to vector<8x32xf32>
    %191 = vector.extract_strided_slice %187 {offsets = [0, 96], sizes = [8, 32], strides = [1, 1]} : vector<8x128xf32> to vector<8x32xf32>
    %192 = arith.mulf %189, %165 : vector<8x32xf32>
    %193 = arith.mulf %188, %190 : vector<8x32xf32>
    %194 = arith.addf %192, %193 : vector<8x32xf32>
    %195 = math.tanh %194 : vector<8x32xf32>
    %196 = arith.mulf %191, %195 : vector<8x32xf32>
    %c6_i32 = arith.constant 6 : i32
    %cst_66 = arith.constant dense<0.000000e+00> : vector<8x128xf32>
    %197 = tpu.matmul %196, %12, %cst_66 {dimension_numbers = #tpu.dot_dimension_numbers<[1], [0], [0], [1], [0, 0, 1, 1], [], []>} : vector<8x32xf32>, vector<32x128xf32>, vector<8x128xf32> -> vector<8x128xf32>
    %198 = arith.addf %197, %15 : vector<8x128xf32>
    %199 = arith.index_cast %c6_i32 : i32 to index
    %c0_67 = arith.constant 0 : index
    %c0_68 = arith.constant 0 : index
    %200 = vector.load %arg11[%199, %c0_67, %c0_68] : memref<8x8x32xf32, #tpu.memory_space<vmem>>, vector<1x8x32xf32>
    %201 = vector.shape_cast %200 : vector<1x8x32xf32> to vector<8x32xf32>
    %cst_69 = arith.constant dense<0.000000e+00> : vector<8x32xf32>
    %202 = tpu.matmul %175, %10, %cst_69 {dimension_numbers = #tpu.dot_dimension_numbers<[1], [0], [0], [1], [0, 0, 1, 1], [], []>} : vector<8x32xf32>, vector<32x32xf32>, vector<8x32xf32> -> vector<8x32xf32>
    %203 = arith.addf %201, %202 : vector<8x32xf32>
    %204 = math.tanh %203 : vector<8x32xf32>
    %cst_70 = arith.constant dense<0.000000e+00> : vector<8x128xf32>
    %205 = tpu.matmul %204, %11, %cst_70 {dimension_numbers = #tpu.dot_dimension_numbers<[1], [0], [0], [1], [0, 0, 1, 1], [], []>} : vector<8x32xf32>, vector<32x128xf32>, vector<8x128xf32> -> vector<8x128xf32>
    %206 = arith.addf %198, %205 : vector<8x128xf32>
    %207 = arith.negf %206 : vector<8x128xf32>
    %208 = math.exp %207 : vector<8x128xf32>
    %cst_71 = arith.constant 1.000000e+00 : f32
    %209 = vector.broadcast %cst_71 : f32 to vector<8x128xf32>
    %210 = arith.addf %209, %208 : vector<8x128xf32>
    %211 = arith.divf %209, %210 : vector<8x128xf32>
    %cst_72 = arith.constant 2.000000e+00 : f32
    %212 = vector.broadcast %cst_72 : f32 to vector<8x128xf32>
    %213 = arith.mulf %212, %211 : vector<8x128xf32>
    %cst_73 = arith.constant 1.000000e+00 : f32
    %214 = vector.broadcast %cst_73 : f32 to vector<8x128xf32>
    %215 = arith.subf %213, %214 : vector<8x128xf32>
    %216 = arith.select %21, %215, %211 : vector<8x128xi1>, vector<8x128xf32>
    %217 = vector.extract_strided_slice %216 {offsets = [0, 0], sizes = [8, 32], strides = [1, 1]} : vector<8x128xf32> to vector<8x32xf32>
    %218 = vector.extract_strided_slice %216 {offsets = [0, 32], sizes = [8, 32], strides = [1, 1]} : vector<8x128xf32> to vector<8x32xf32>
    %219 = vector.extract_strided_slice %216 {offsets = [0, 64], sizes = [8, 32], strides = [1, 1]} : vector<8x128xf32> to vector<8x32xf32>
    %220 = vector.extract_strided_slice %216 {offsets = [0, 96], sizes = [8, 32], strides = [1, 1]} : vector<8x128xf32> to vector<8x32xf32>
    %221 = arith.mulf %218, %194 : vector<8x32xf32>
    %222 = arith.mulf %217, %219 : vector<8x32xf32>
    %223 = arith.addf %221, %222 : vector<8x32xf32>
    %224 = math.tanh %223 : vector<8x32xf32>
    %225 = arith.mulf %220, %224 : vector<8x32xf32>
    %c7_i32 = arith.constant 7 : i32
    %cst_74 = arith.constant dense<0.000000e+00> : vector<8x128xf32>
    %226 = tpu.matmul %225, %12, %cst_74 {dimension_numbers = #tpu.dot_dimension_numbers<[1], [0], [0], [1], [0, 0, 1, 1], [], []>} : vector<8x32xf32>, vector<32x128xf32>, vector<8x128xf32> -> vector<8x128xf32>
    %227 = arith.addf %226, %15 : vector<8x128xf32>
    %228 = arith.index_cast %c7_i32 : i32 to index
    %c0_75 = arith.constant 0 : index
    %c0_76 = arith.constant 0 : index
    %229 = vector.load %arg11[%228, %c0_75, %c0_76] : memref<8x8x32xf32, #tpu.memory_space<vmem>>, vector<1x8x32xf32>
    %230 = vector.shape_cast %229 : vector<1x8x32xf32> to vector<8x32xf32>
    %cst_77 = arith.constant dense<0.000000e+00> : vector<8x32xf32>
    %231 = tpu.matmul %204, %10, %cst_77 {dimension_numbers = #tpu.dot_dimension_numbers<[1], [0], [0], [1], [0, 0, 1, 1], [], []>} : vector<8x32xf32>, vector<32x32xf32>, vector<8x32xf32> -> vector<8x32xf32>
    %232 = arith.addf %230, %231 : vector<8x32xf32>
    %233 = math.tanh %232 : vector<8x32xf32>
    %cst_78 = arith.constant dense<0.000000e+00> : vector<8x128xf32>
    %234 = tpu.matmul %233, %11, %cst_78 {dimension_numbers = #tpu.dot_dimension_numbers<[1], [0], [0], [1], [0, 0, 1, 1], [], []>} : vector<8x32xf32>, vector<32x128xf32>, vector<8x128xf32> -> vector<8x128xf32>
    %235 = arith.addf %227, %234 : vector<8x128xf32>
    %236 = arith.negf %235 : vector<8x128xf32>
    %237 = math.exp %236 : vector<8x128xf32>
    %cst_79 = arith.constant 1.000000e+00 : f32
    %238 = vector.broadcast %cst_79 : f32 to vector<8x128xf32>
    %239 = arith.addf %238, %237 : vector<8x128xf32>
    %240 = arith.divf %238, %239 : vector<8x128xf32>
    %cst_80 = arith.constant 2.000000e+00 : f32
    %241 = vector.broadcast %cst_80 : f32 to vector<8x128xf32>
    %242 = arith.mulf %241, %240 : vector<8x128xf32>
    %cst_81 = arith.constant 1.000000e+00 : f32
    %243 = vector.broadcast %cst_81 : f32 to vector<8x128xf32>
    %244 = arith.subf %242, %243 : vector<8x128xf32>
    %245 = arith.select %21, %244, %240 : vector<8x128xi1>, vector<8x128xf32>
    %246 = vector.extract_strided_slice %245 {offsets = [0, 0], sizes = [8, 32], strides = [1, 1]} : vector<8x128xf32> to vector<8x32xf32>
    %247 = vector.extract_strided_slice %245 {offsets = [0, 32], sizes = [8, 32], strides = [1, 1]} : vector<8x128xf32> to vector<8x32xf32>
    %248 = vector.extract_strided_slice %245 {offsets = [0, 64], sizes = [8, 32], strides = [1, 1]} : vector<8x128xf32> to vector<8x32xf32>
    %249 = vector.extract_strided_slice %245 {offsets = [0, 96], sizes = [8, 32], strides = [1, 1]} : vector<8x128xf32> to vector<8x32xf32>
    %250 = arith.mulf %247, %223 : vector<8x32xf32>
    %251 = arith.mulf %246, %248 : vector<8x32xf32>
    %252 = arith.addf %250, %251 : vector<8x32xf32>
    %253 = math.tanh %252 : vector<8x32xf32>
    %254 = arith.mulf %249, %253 : vector<8x32xf32>
    %c8_i32 = arith.constant 8 : i32
    %c0_82 = arith.constant 0 : index
    %c0_83 = arith.constant 0 : index
    %255 = vector.load %arg8[%c0_82, %c0_83] : memref<32x128xf32, #tpu.memory_space<vmem>>, vector<32x128xf32>
    %cst_84 = arith.constant dense<0.000000e+00> : vector<8x128xf32>
    %256 = tpu.matmul %254, %255, %cst_84 {dimension_numbers = #tpu.dot_dimension_numbers<[1], [0], [0], [1], [0, 0, 1, 1], [], []>} : vector<8x32xf32>, vector<32x128xf32>, vector<8x128xf32> -> vector<8x128xf32>
    %c0_85 = arith.constant 0 : index
    %c0_86 = arith.constant 0 : index
    %257 = vector.load %arg9[%c0_85, %c0_86] : memref<1x128xf32, #tpu.memory_space<vmem>>, vector<1x128xf32>
    %258 = vector.broadcast %257 : vector<1x128xf32> to vector<8x128xf32>
    %259 = arith.addf %256, %258 : vector<8x128xf32>
    %c0_87 = arith.constant 0 : index
    %c0_88 = arith.constant 0 : index
    %260 = vector.load %arg10[%c0_87, %c0_88] : memref<8x128xf32, #tpu.memory_space<vmem>>, vector<8x128xf32>
    tpu.vector_store %arg10[%c0_87, %c0_88], %259 {strides = array<i32>} : memref<8x128xf32, #tpu.memory_space<vmem>>, vector<8x128xf32>,
    return
  }
  func.func @transform_0(%arg0: i32) -> (i32, i32, i32) {
    %c0_i32 = arith.constant 0 : i32
    %c0_i32_0 = arith.constant 0 : i32
    %c0_i32_1 = arith.constant 0 : i32
    return %c0_i32, %arg0, %c0_i32_0 : i32, i32, i32
  }
  func.func @transform_1(%arg0: i32) -> (i32, i32) {
    %c0_i32 = arith.constant 0 : i32
    %c0_i32_0 = arith.constant 0 : i32
    %c0_i32_1 = arith.constant 0 : i32
    return %c0_i32, %c0_i32_0 : i32, i32
  }
  func.func @transform_2(%arg0: i32) -> (i32, i32) {
    %c0_i32 = arith.constant 0 : i32
    %c0_i32_0 = arith.constant 0 : i32
    %c0_i32_1 = arith.constant 0 : i32
    return %c0_i32, %c0_i32_0 : i32, i32
  }
  func.func @transform_3(%arg0: i32) -> (i32, i32) {
    %c0_i32 = arith.constant 0 : i32
    %c0_i32_0 = arith.constant 0 : i32
    %c0_i32_1 = arith.constant 0 : i32
    return %c0_i32, %c0_i32_0 : i32, i32
  }
  func.func @transform_4(%arg0: i32) -> (i32, i32) {
    %c0_i32 = arith.constant 0 : i32
    %c0_i32_0 = arith.constant 0 : i32
    %c0_i32_1 = arith.constant 0 : i32
    return %c0_i32, %c0_i32_0 : i32, i32
  }
  func.func @transform_5(%arg0: i32) -> (i32, i32) {
    %c0_i32 = arith.constant 0 : i32
    %c0_i32_0 = arith.constant 0 : i32
    %c0_i32_1 = arith.constant 0 : i32
    return %c0_i32, %c0_i32_0 : i32, i32
  }
  func.func @transform_6(%arg0: i32) -> (i32, i32) {
    %c0_i32 = arith.constant 0 : i32
    %c0_i32_0 = arith.constant 0 : i32
    %c0_i32_1 = arith.constant 0 : i32
    return %c0_i32, %c0_i32_0 : i32, i32
  }
  func.func @transform_7(%arg0: i32) -> (i32, i32) {
    %c0_i32 = arith.constant 0 : i32
    %c0_i32_0 = arith.constant 0 : i32
    %c0_i32_1 = arith.constant 0 : i32
    return %c0_i32, %c0_i32_0 : i32, i32
  }
  func.func @transform_8(%arg0: i32) -> (i32, i32) {
    %c0_i32 = arith.constant 0 : i32
    %c0_i32_0 = arith.constant 0 : i32
    %c0_i32_1 = arith.constant 0 : i32
    return %c0_i32, %c0_i32_0 : i32, i32
  }
  func.func @transform_9(%arg0: i32) -> (i32, i32) {
    %c0_i32 = arith.constant 0 : i32
    %c0_i32_0 = arith.constant 0 : i32
    return %arg0, %c0_i32 : i32, i32
  }
}

</mosaic_0001>

<bundles_post_ra>
// kernel: tpu_custom_call.1
= control target key start
LH: loop header
LB: loop body
LE: loop exit
PB: predicated region body
PF: predicated region fallthrough
CT: control target
= control target key end

     0   :  { %14 = vsyncpa [#allocation4], 0  ;;  %s3604_s0 = inlined_call_operand.hbm [shape: f32[8,8,16], index: 0, kind: input, shape index: {}]   ;;  %s3605_s1 = inlined_call_operand.hbm [shape: f32[16,32], index: 1, kind: input, shape index: {}]   ;;  %s3606_s2 = inlined_call_operand.hbm [shape: f32[32,32], index: 2, kind: input, shape index: {}]   ;;  %s3607_s3 = inlined_call_operand.vmem [shape: f32[1,32], index: 3, kind: input, shape index: {}]   ;;  %s3608_s4 = inlined_call_operand.hbm [shape: f32[32,128], index: 4, kind: input, shape index: {}]   ;;  %s3609_s5 = inlined_call_operand.hbm [shape: f32[32,128], index: 5, kind: input, shape index: {}]   ;;  %s3610_s6 = inlined_call_operand.vmem [shape: f32[1,128], index: 6, kind: input, shape index: {}]   ;;  %s3611_s7 = inlined_call_operand.hbm [shape: f32[32,128], index: 7, kind: input, shape index: {}]   ;;  %s3612_s8 = inlined_call_operand.vmem [shape: f32[1,128], index: 8, kind: input, shape index: {}]   ;;  %s3613_s9 = inlined_call_operand.hbm [shape: f32[8,128], index: 9, kind: output, shape index: {}]  }
   0x1   :  { %15 = vsyncpa [#allocation7], 0 }
   0x2   :  { %16 = vsyncpa [#allocation10], 0 }
   0x3   :  { %17 = vsyncpa [#allocation13], 0 }
   0x4   :  { %18 = vsyncpa [#allocation5], 0  ;;  %s3100_s30 = smov [#allocation6]   ;;  %s3101_s11 = smov [#allocation9]  }
   0x5   :  { %s36_s10 = sshll.u32 %s3100_s30, 4  ;;  %s62_s12 = sshll.u32 %s3101_s11, 4  ;;  %s37_s10 = int_to_ptr.vmem [resolvable:$true] %s36_s10  ;;  %s63_s12 = int_to_ptr.vmem [resolvable:$true] %s62_s12 }
   0x6   :  { %s2958_s13 = scalar_lea.vmem %s37_s10, 256  ;;  %p2963_p1 = scmp.lt.s32.totalorder %s37_s10, %s37_s10 }
   0x7   :  { %p2959_p0 = scmp.ne.s32.totalorder %s37_s10, %s2958_s13  ;;  %p2964_p2 = scmp.lt.s32.totalorder %s2958_s13, %s2958_s13 }
   0x9   :  { %p2965_p3 = por %p2964_p2, %p2963_p1 }
   0xb   :  { %p2966_p4 = pnand %p2965_p3, %p2959_p0 }
   0xd   :  { %2969 = shalt.err (!%p2966_p4)
}
   0xe   :  { %s3102_s14 = smov 128   ;;  %s3103_s15 = smov 8  }
   0xf   :  { %42 = dma.hbm_to_vmem [thread:$0]  %s3605_s1, 256, %s37_s10, [#allocation7], %s3102_s14, %s3102_s14, %s3103_s15  }
  0x10   :  { %s2978_s18 = scalar_lea.vmem %s63_s12, 512  ;;  %p2983_p6 = scmp.lt.s32.totalorder %s63_s12, %s63_s12 }
  0x11   :  { %p2979_p5 = scmp.ne.s32.totalorder %s63_s12, %s2978_s18  ;;  %p2984_p7 = scmp.lt.s32.totalorder %s2978_s18, %s2978_s18 }
  0x13   :  { %p2985_p8 = por %p2984_p7, %p2983_p6 }
  0x15   :  { %p2986_p9 = pnand %p2985_p8, %p2979_p5 }
  0x17   :  { %2989 = shalt.err (!%p2986_p9)
}
  0x18   :  { %68 = dma.hbm_to_vmem [thread:$0]  %s3608_s4, 512, %s63_s12, [#allocation10], %s3102_s14, %s3102_s14, %s3103_s15  }
  0x19   :  { %s3104_s21 = smov [#allocation3]   ;;  %s3105_s23 = smov [#allocation8]  }
  0x1a   :  { %s24_s22 = sshll.u32 %s3104_s21, 4  ;;  %s48_s24 = sshll.u32 %s3105_s23, 4  ;;  %s25_s22 = int_to_ptr.vmem [resolvable:$true] %s24_s22  ;;  %s49_s24 = int_to_ptr.vmem [resolvable:$true] %s48_s24 }
  0x1b   :  { %s2998_s1 = scalar_lea.vmem %s25_s22, 1024  ;;  %p3003_p11 = scmp.lt.s32.totalorder %s25_s22, %s25_s22 }
  0x1c   :  { %p2999_p10 = scmp.ne.s32.totalorder %s25_s22, %s2998_s1  ;;  %p3004_p12 = scmp.lt.s32.totalorder %s2998_s1, %s2998_s1 }
  0x1e   :  { %p3005_p13 = por %p3004_p12, %p3003_p11 }
  0x20   :  { %p3006_p0 = pnand %p3005_p13, %p2999_p10 }
  0x22   :  { %3009 = shalt.err (!%p3006_p0)
}
  0x23   :  { %30 = dma.hbm_to_vmem [thread:$0]  %s3604_s0, 1024, %s25_s22, [#allocation4], %s3102_s14, %s3102_s14, %s3103_s15  }
  0x24   :  { %s3018_s4 = scalar_lea.vmem %s49_s24, 512  ;;  %p3023_p2 = scmp.lt.s32.totalorder %s49_s24, %s49_s24 }
  0x25   :  { %p3019_p1 = scmp.ne.s32.totalorder %s49_s24, %s3018_s4  ;;  %p3024_p3 = scmp.lt.s32.totalorder %s3018_s4, %s3018_s4 }
  0x27   :  { %p3025_p4 = por %p3024_p3, %p3023_p2 }
  0x29   :  { %p3026_p5 = pnand %p3025_p4, %p3019_p1 }
  0x2b   :  { %3029 = shalt.err (!%p3026_p5)
}
  0x2c   :  { %54 = dma.hbm_to_vmem [thread:$0]  %s3606_s2, 512, %s49_s24, [#allocation7], %s3102_s14, %s3102_s14, %s3103_s15  }
  0x2d   :  { %s3106_s29 = smov [#allocation11]   ;;  %s3107_s10 = smov [#allocation12]  }
  0x2e   :  { %s74_s30 = sshll.u32 %s3106_s29, 4  ;;  %s88_s11 = sshll.u32 %s3107_s10, 4  ;;  %s75_s30 = int_to_ptr.vmem [resolvable:$true] %s74_s30  ;;  %s89_s11 = int_to_ptr.vmem [resolvable:$true] %s88_s11 }
  0x2f   :  { %s3038_s0 = scalar_lea.vmem %s75_s30, 512  ;;  %p3043_p7 = scmp.lt.s32.totalorder %s75_s30, %s75_s30 }
  0x30   :  { %p3039_p6 = scmp.ne.s32.totalorder %s75_s30, %s3038_s0  ;;  %p3044_p8 = scmp.lt.s32.totalorder %s3038_s0, %s3038_s0 }
  0x32   :  { %p3045_p9 = por %p3044_p8, %p3043_p7 }
  0x34   :  { %p3046_p10 = pnand %p3045_p9, %p3039_p6 }
  0x36   :  { %3049 = shalt.err (!%p3046_p10)
}
  0x37   :  { %80 = dma.hbm_to_vmem [thread:$0]  %s3609_s5, 512, %s75_s30, [#allocation10], %s3102_s14, %s3102_s14, %s3103_s15  }
  0x38   :  { %s3058_s2 = scalar_lea.vmem %s89_s11, 512  ;;  %p3063_p12 = scmp.lt.s32.totalorder %s89_s11, %s89_s11 }
  0x39   :  { %p3059_p11 = scmp.ne.s32.totalorder %s89_s11, %s3058_s2  ;;  %p3064_p13 = scmp.lt.s32.totalorder %s3058_s2, %s3058_s2 }
  0x3b   :  { %p3065_p0 = por %p3064_p13, %p3063_p12 }
  0x3d   :  { %p3066_p1 = pnand %p3065_p0, %p3059_p11 }
  0x3f   :  { %3069 = shalt.err (!%p3066_p1)
}
  0x40   :  { %94 = dma.hbm_to_vmem [thread:$0]  %s3611_s7, 512, %s89_s11, [#allocation13], %s3102_s14, %s3102_s14, %s3103_s15  }
  0x41   :  { %3090 = dma.done.wait [#allocation4], 1024  }
  0x42   :  { %3091 = vsyncadd [#allocation4], 4294966272 }
  0x43   :  { %3092 = dma.done.wait [#allocation7], 768  }
  0x44   :  { %3093 = vsyncadd [#allocation7], 4294966528 }
  0x45   :  { %3094 = dma.done.wait [#allocation10], 1024  }
  0x46   :  { %3095 = vsyncadd [#allocation10], 4294966272 }
  0x47   :  { %3096 = dma.done.wait [#allocation13], 512  }
  0x48   :  { %3097 = vsyncadd [#allocation13], 4294966784  ;;  %v3108_v0 = vmov 0.0   ;;  %vm3109_vm0 = vmmov 0   ;;  %v124_v1 = vld [vmem:[#allocation6 + $0x8] sm:$0xff]  ;;  %v123_v3 = vld [vmem:[#allocation6] sm:$0xff]  ;;  %v298_v57 = vlaneseq }
  0x49   :  { %2598 = vmatprep.subr.mxu1 %v3108_v0  ;;  %2606 = vmatprep.mubr.msk.f32.mxu1 %vm3109_vm0, %v3108_v0  ;;  %v3202_v2 = vld [vmem:[#allocation11 + $0x18] sm:$0xff]  ;;  %v3205_v4 = vld [vmem:[#allocation11 + $0x10] sm:$0xff]  ;;  %vm125_vm1 = vcmask 130048   ;;  %v3209_v7 = vld [vmem:[#allocation11 + $0x8] sm:$0xff]  ;;  %vm270_vm2 = vcmask 261120   ;;  %s3111_s15 = smov 32  }
  0x4a   :  { %2582 = vmatprep.subr.mxu0 %v124_v1  ;;  %2599 = vmatpush3.msra.mxu1 %v3202_v2  ;;  %v115_v5 = vld [vmem:[#allocation3] sm:$0xff]  ;;  %v116_v6 = vld [vmem:[#allocation3 + $0x8] sm:$0xff]  ;;  %v3214_v8 = vld [vmem:[#allocation11] sm:$0xff]  ;;  %v299_v58 = vand.u32 127, %v298_v57  ;;  %s3112_s20 = smov [#allocation14]  }
  0x4b   :  { %2583 = vmatpush3.msra.mxu0 %v124_v1  ;;  %2600 = vmatprep.subr.mxu1 %v3108_v0  ;;  %v3219_v9 = vld [vmem:[#allocation8 + $0x18] sm:$0xff]  ;;  %v3224_v10 = vld [vmem:[#allocation8 + $0x10] sm:$0xff]  ;;  %v3230_v11 = vld [vmem:[#allocation8 + $0x8] sm:$0xff]  ;;  %s2385_s21 = sshll.u32 %s3112_s20, 4  ;;  %s2386_s21 = int_to_ptr.vmem [resolvable:$true] %s2385_s21 }
  0x4c   :  { %2584 = vmatprep.subr.mxu0 %v123_v3  ;;  %2601 = vmatpush3.msra.mxu1 %v3205_v4  ;;  %v3234_v12 = vld [vmem:[#allocation8] sm:$0xff]  ;;  %v3251_v14 = vld [vmem:[#allocation9 + $0x18] sm:$0xff]  ;;  %v118_v15 = vld [vmem:[#allocation3 + $0x18] sm:$0xff]  ;;  %vm300_vm3 = vcmp.ge.s32.totalorder %v299_v58, 64  ;;  %vm301_vm4 = vcmp.lt.s32.totalorder %v299_v58, 96  ;;  %s3070_s22 = scalar_lea.vmem %s2386_s21, 128  ;;  %p3075_p3 = scmp.lt.s32.totalorder %s2386_s21, %s2386_s21 }
  0x4d   :  { %2585 = vmatpush3.msra.mxu0 %v123_v3  ;;  %2586 = vmatprep.mubr.msk.f32.mxu0 %vm125_vm1, %v115_v5  ;;  %v117_v13 = vld [vmem:[#allocation3 + $0x10] sm:$0xff]  ;;  %v3254_v16 = vld [vmem:[#allocation9 + $0x10] sm:$0xff]  ;;  %v3259_v18 = vld [vmem:[#allocation9 + $0x8] sm:$0xff]  ;;  %p3071_p2 = scmp.ne.s32.totalorder %s2386_s21, %s3070_s22  ;;  %p3076_p4 = scmp.lt.s32.totalorder %s3070_s22, %s3070_s22 }
  0x4e   :  { %2602 = vmatprep.subr.mxu1 %v3108_v0  ;;  %2587 = vmatmul.mubr.msk.f32.vlgmr.msra.gmra.mxu0 %vm125_vm1, %v116_v6  ;;  %v119_v17 = vld [vmem:[#allocation3 + $0x20] sm:$0xff]  ;;  %v120_v19 = vld [vmem:[#allocation3 + $0x28] sm:$0xff]  ;;  %v121_v20 = vld [vmem:[#allocation3 + $0x30] sm:$0xff] }
  0x4f   :  { %2603 = vmatpush3.msra.mxu1 %v3209_v7  ;;  %2620 = vmatprep.subr.mxu0 %v3108_v0  ;;  %v3264_v21 = vld [vmem:[#allocation9] sm:$0xff]  ;;  %v122_v22 = vld [vmem:[#allocation3 + $0x38] sm:$0xff]  ;;  %v2405_v23 = vld [vmem:[%s3607_s3] ss:$0 sm:$0xff]  ;;  %p3077_p5 = por %p3076_p4, %p3075_p3 }
  0x50   :  { %2604 = vmatprep.subr.mxu1 %v3108_v0  ;;  %2589 = vmatprep.mubr.msk.f32.mxu0 %vm125_vm1, %v117_v13  ;;  %v3311_v47 = vld [vmem:[%s3610_s6] ss:$0 sm:$0xff]  ;;  %vm3314_vm5 = vmand %vm300_vm3, %vm301_vm4  ;;  %s3110_s6 = smov 64   ;;  %v2292_v61 = vld [vmem:[#allocation12] sm:$0xff] }
  0x51   :  { %2605 = vmatpush3.msra.mxu1 %v3214_v8  ;;  %2621 = vmatpush3.msra.mxu0 %v3251_v14  ;;  %p3078_p6 = pnand %p3077_p5, %p3071_p2 }
  0x52   :  { %2607 = vmatmul.mubr.f32.vlgmr.msra.gmra.mxu1 %v3108_v0  ;;  %2609 = vmatprep.subr.mxu1 %v3108_v0 }
  0x53   :  { %2610 = vmatpush3.msra.mxu1 %v3219_v9  ;;  %2617 = vmatprep.mubr.msk.f32.mxu1 %vm3109_vm0, %v3108_v0 }
  0x54   :  { %2611 = vmatprep.subr.mxu1 %v3108_v0  ;;  %2590 = vmatmul.mubr.msk.f32.gmra.mxu0 %vm125_vm1, %v118_v15 }
  0x55   :  { %2612 = vmatpush3.msra.mxu1 %v3224_v10  ;;  %2622 = vmatprep.subr.mxu0 %v3108_v0 }
  0x56   :  { %2613 = vmatprep.subr.mxu1 %v3108_v0  ;;  %2623 = vmatpush3.msra.mxu0 %v3254_v16 }
  0x57   :  { %2614 = vmatpush3.msra.mxu1 %v3230_v11  ;;  %2592 = vmatprep.mubr.msk.f32.mxu0 %vm125_vm1, %v119_v17 }
  0x58   :  { %2615 = vmatprep.subr.mxu1 %v3108_v0  ;;  %2624 = vmatprep.subr.mxu0 %v3108_v0 }
  0x59   :  { %2616 = vmatpush3.msra.mxu1 %v3234_v12  ;;  %2625 = vmatpush3.msra.mxu0 %v3259_v18 }
  0x5a   :  { %2618 = vmatmul.mubr.f32.vlgmr.msra.gmra.mxu1 %v3108_v0  ;;  %2631 = vmatprep.subr.mxu1 %v3108_v0 }
  0x5b   :  { %2632 = vmatpush3.msra.mxu1 %v3202_v2  ;;  %2639 = vmatprep.mubr.msk.f32.mxu1 %vm3109_vm0, %v3108_v0 }
  0x5c   :  { %2633 = vmatprep.subr.mxu1 %v3108_v0  ;;  %2593 = vmatmul.mubr.msk.f32.gmra.mxu0 %vm125_vm1, %v120_v19 }
  0x5d   :  { %2634 = vmatpush3.msra.mxu1 %v3205_v4  ;;  %2626 = vmatprep.subr.mxu0 %v3108_v0 }
  0x5e   :  { %2635 = vmatprep.subr.mxu1 %v3108_v0  ;;  %2595 = vmatprep.mubr.msk.f32.mxu0 %vm125_vm1, %v121_v20 }
  0x5f   :  { %2636 = vmatpush3.msra.mxu1 %v3209_v7  ;;  %2627 = vmatpush3.msra.mxu0 %v3264_v21 }
  0x60   :  { %2637 = vmatprep.subr.mxu1 %v3108_v0  ;;  %2642 = vmatprep.subr.mxu0 %v3108_v0 }
  0x61   :  { %2638 = vmatpush3.msra.mxu1 %v3214_v8  ;;  %2596 = vmatmul.mubr.msk.f32.gmra.mxu0 %vm125_vm1, %v122_v22 }
  0x62   :  { %2653 = vmatprep.subr.mxu1 %v3108_v0  ;;  %2628 = vmatprep.mubr.msk.f32.mxu0 %vm3109_vm0, %v3108_v0 }
 0x10e   :  { %v2588_v24 = vpop.f32.mrf.mxu0 }
 0x10f   :  { %v263_v25 = vadd.f32 %v2588_v24, %v2405_v23 }
 0x110   :  { %v216_v26 = vpop.f32.mrf.mxu0 }
 0x111   :  { %272 = vst.msk [vmem:[#allocation2 + $0x8] sm:$0xff] %vm270_vm2, %v263_v25  ;;  %v262_v27 = vadd.f32 %v2405_v23, %v216_v26 }
 0x112   :  { %v372_v28 = vpop.f32.mrf.mxu1 }
 0x113   :  { %271 = vst.msk [vmem:[#allocation2] sm:$0xff] %vm270_vm2, %v262_v27  ;;  %v373_v48 = vadd.f32 %v3311_v47, %v372_v28 }
 0x114   :  { %v2608_v29 = vpop.f32.mrf.mxu1  ;;  %v2591_v35 = vpop.f32.mrf.mxu0 }
 0x115   :  { %v265_v36 = vadd.f32 %v2591_v35, %v2405_v23 }
 0x116   :  { %v226_v37 = vpop.f32.mrf.mxu0 }
 0x117   :  { %274 = vst.msk [vmem:[#allocation2 + $0x18] sm:$0xff] %vm270_vm2, %v265_v36  ;;  %v264_v38 = vadd.f32 %v2405_v23, %v226_v37 }
 0x118   :  { %v625_v20 = vld [vmem:[#allocation2 + $0x8] sm:$0xff] }
 0x119   :  { %273 = vst.msk [vmem:[#allocation2 + $0x10] sm:$0xff] %vm270_vm2, %v264_v38 }
 0x11a   :  { %v376_v30 = vld [vmem:[#allocation2] sm:$0xff]  ;;  %v443_v31 = vpop.f32.mrf.mxu1 }
 0x11b   :  { %v447_v32 = vadd.f32 %v443_v31, %v376_v30 }
 0x11c   :  { %v2619_v33 = vpop.f32.mrf.mxu1  ;;  %v2594_v39 = vpop.f32.mrf.mxu0 }
 0x11d   :  { %2886 = vtanh.f32 %v447_v32  ;;  %v267_v40 = vadd.f32 %v2594_v39, %v2405_v23 }
 0x11e   :  { %v236_v41 = vpop.f32.mrf.mxu0 }
 0x11f   :  { %276 = vst.msk [vmem:[#allocation2 + $0x28] sm:$0xff] %vm270_vm2, %v267_v40  ;;  %v266_v42 = vadd.f32 %v2405_v23, %v236_v41 }
 0x121   :  { %v2597_v43 = vpop.f32.mrf.mxu0  ;;  %275 = vst.msk [vmem:[#allocation2 + $0x20] sm:$0xff] %vm270_vm2, %v266_v42 }
 0x122   :  { %v269_v44 = vadd.f32 %v2597_v43, %v2405_v23 }
 0x123   :  { %v246_v45 = vpop.f32.mrf.mxu0 }
 0x124   :  { %278 = vst.msk [vmem:[#allocation2 + $0x38] sm:$0xff] %vm270_vm2, %v269_v44  ;;  %v268_v46 = vadd.f32 %v2405_v23, %v246_v45 }
 0x126   :  { %277 = vst.msk [vmem:[#allocation2 + $0x30] sm:$0xff] %vm270_vm2, %v268_v46 }
 0x12a   :  { %v2887_v34 = vpop.eup %2886 }
 0x12b   :  { %2629 = vmatmul.mubr.msk.f32.vlgmr.msra.gmra.mxu0 %vm270_vm2, %v2887_v34 }
 0x12c   :  { %2643 = vmatpush3.msra.mxu0 %v3219_v9  ;;  %2650 = vmatprep.mubr.msk.f32.mxu0 %vm3109_vm0, %v3108_v0 }
 0x12d   :  { %2644 = vmatprep.subr.mxu0 %v3108_v0 }
 0x12e   :  { %2645 = vmatpush3.msra.mxu0 %v3224_v10 }
 0x12f   :  { %2646 = vmatprep.subr.mxu0 %v3108_v0 }
 0x130   :  { %2647 = vmatpush3.msra.mxu0 %v3230_v11 }
 0x131   :  { %2648 = vmatprep.subr.mxu0 %v3108_v0 }
 0x132   :  { %2649 = vmatpush3.msra.mxu0 %v3234_v12 }
 0x133   :  { %2651 = vmatmul.mubr.msk.f32.vlgmr.msra.gmra.mxu0 %vm270_vm2, %v2887_v34  ;;  %2664 = vmatprep.subr.mxu0 %v3108_v0 }
 0x134   :  { %2665 = vmatpush3.msra.mxu0 %v3202_v2  ;;  %2672 = vmatprep.mubr.msk.f32.mxu0 %vm3109_vm0, %v3108_v0 }
 0x135   :  { %2666 = vmatprep.subr.mxu0 %v3108_v0 }
 0x136   :  { %2667 = vmatpush3.msra.mxu0 %v3205_v4 }
 0x137   :  { %2668 = vmatprep.subr.mxu0 %v3108_v0 }
 0x138   :  { %2669 = vmatpush3.msra.mxu0 %v3209_v7 }
 0x139   :  { %2670 = vmatprep.subr.mxu0 %v3108_v0 }
 0x13a   :  { %2671 = vmatpush3.msra.mxu0 %v3214_v8 }
 0x13b   :  { %2686 = vmatprep.subr.mxu0 %v3108_v0 }
 0x1eb   :  { %v518_v49 = vpop.f32.mrf.mxu0 }
 0x1ec   :  { %v522_v50 = vadd.f32 %v518_v49, %v373_v48  ;;  %v874_v49 = vld [vmem:[#allocation2 + $0x10] sm:$0xff] }
 0x1ed   :  { %v2630_v51 = vpop.f32.mrf.mxu0 }
 0x1ee   :  { %v2408_v52 = vmul.f32 -1.442695, %v522_v50 }
 0x1f0   :  { %2888 = vpow2.f32 %v2408_v52 }
 0x1f3   :  { %v692_v53 = vpop.f32.mrf.mxu0 }
 0x1f4   :  { %v696_v22 = vadd.f32 %v692_v53, %v625_v20 }
 0x1f5   :  { %v2652_v54 = vpop.f32.mrf.mxu0 }
 0x1fd   :  { %v2889_v55 = vpop.eup %2888 }
 0x1fe   :  { %v526_v56 = vadd.f32 1.0, %v2889_v55 }
 0x200   :  { %2890 = vrcp.f32 %v526_v56 }
 0x20d   :  { %v2891_v59 = vpop.eup %2890 }
 0x20e   :  { %v529_v60 = vmul.f32 2.0, %v2891_v59 }
 0x210   :  { %v2409_v62 = vadd.f32 -1.0, %v529_v60 }
 0x212   :  { %v531_v63 = vsel %vm3314_vm5, %v2409_v62, %v2891_v59 }
 0x213   :  { %534 = vrot.lane.b32.xlu0 %v531_v63, %s3110_s6  ;;  %v532_v5 = vmul.f32 0.0, %v531_v63 }
 0x285   :  { %v535_v1 = vpop.permute.xlu0 %534 }
 0x286   :  { %v537_v3 = vmul.f32 %v535_v1, %v531_v63 }
 0x288   :  { %539 = vrot.lane.b32.xlu0 %v537_v3, %s3111_s15 }
 0x2fa   :  { %v540_v6 = vpop.permute.xlu0 %539 }
 0x2fb   :  { %v3322_v13 = vadd.f32 %v540_v6, %v532_v5 }
 0x2fd   :  { %2892 = vtanh.f32 %v3322_v13 }
 0x2fe   :  { %2894 = vtanh.f32 %v696_v22 }
 0x30a   :  { %v2893_v15 = vpop.eup %2892 }
 0x30b   :  { %545 = vrot.lane.b32.xlu1 %v2893_v15, %s3110_s6  ;;  %v2895_v24 = vpop.eup %2894 }
 0x37d   :  { %v546_v17 = vpop.permute.xlu1 %545 }
 0x37e   :  { %v548_v19 = vmul.f32 %v546_v17, %v531_v63 }
 0x380   :  { %550 = vrot.lane.b32.xlu1 %v548_v19, %s3111_s15 }
 0x3f2   :  { %v551_v23 = vpop.permute.xlu1 %550 }
 0x3f3   :  { %2640 = vmatmul.mubr.msk.f32.vlgmr.msra.gmra.mxu1 %vm270_vm2, %v551_v23 }
 0x3f4   :  { %2654 = vmatpush3.msra.mxu1 %v3251_v14  ;;  %2661 = vmatprep.mubr.msk.f32.mxu1 %vm3109_vm0, %v3108_v0 }
 0x3f5   :  { %2655 = vmatprep.subr.mxu1 %v3108_v0 }
 0x3f6   :  { %2656 = vmatpush3.msra.mxu1 %v3254_v16 }
 0x3f7   :  { %2657 = vmatprep.subr.mxu1 %v3108_v0 }
 0x3f8   :  { %2658 = vmatpush3.msra.mxu1 %v3259_v18 }
 0x3f9   :  { %2659 = vmatprep.subr.mxu1 %v3108_v0 }
 0x3fa   :  { %2660 = vmatpush3.msra.mxu1 %v3264_v21 }
 0x3fb   :  { %2662 = vmatmul.mubr.msk.f32.vlgmr.msra.gmra.mxu1 %vm270_vm2, %v2895_v24  ;;  %2675 = vmatprep.subr.mxu1 %v3108_v0 }
 0x3fc   :  { %2676 = vmatpush3.msra.mxu1 %v3219_v9  ;;  %2683 = vmatprep.mubr.msk.f32.mxu1 %vm3109_vm0, %v3108_v0 }
 0x3fd   :  { %2677 = vmatprep.subr.mxu1 %v3108_v0 }
 0x3fe   :  { %2678 = vmatpush3.msra.mxu1 %v3224_v10 }
 0x3ff   :  { %2679 = vmatprep.subr.mxu1 %v3108_v0 }
 0x400   :  { %2680 = vmatpush3.msra.mxu1 %v3230_v11 }
 0x401   :  { %2681 = vmatprep.subr.mxu1 %v3108_v0 }
 0x402   :  { %2682 = vmatpush3.msra.mxu1 %v3234_v12 }
 0x403   :  { %2684 = vmatmul.mubr.msk.f32.vlgmr.msra.gmra.mxu1 %vm270_vm2, %v2895_v24  ;;  %2697 = vmatprep.subr.mxu1 %v3108_v0 }
 0x404   :  { %2698 = vmatpush3.msra.mxu1 %v3202_v2  ;;  %2705 = vmatprep.mubr.msk.f32.mxu1 %vm3109_vm0, %v3108_v0 }
 0x405   :  { %2699 = vmatprep.subr.mxu1 %v3108_v0 }
 0x406   :  { %2700 = vmatpush3.msra.mxu1 %v3205_v4 }
 0x407   :  { %2701 = vmatprep.subr.mxu1 %v3108_v0 }
 0x408   :  { %2702 = vmatpush3.msra.mxu1 %v3209_v7 }
 0x409   :  { %2703 = vmatprep.subr.mxu1 %v3108_v0 }
 0x40a   :  { %2704 = vmatpush3.msra.mxu1 %v3214_v8 }
 0x40b   :  { %2719 = vmatprep.subr.mxu1 %v3108_v0 }
 0x4b3   :  { %v620_v25 = vpop.f32.mrf.mxu1 }
 0x4b4   :  { %v621_v27 = vadd.f32 %v3311_v47, %v620_v25 }
 0x4b5   :  { %v2641_v26 = vpop.f32.mrf.mxu1 }
 0x4b6   :  { %v1123_v26 = vld [vmem:[#allocation2 + $0x18] sm:$0xff] }
 0x4bb   :  { %v767_v28 = vpop.f32.mrf.mxu1 }
 0x4bc   :  { %v771_v29 = vadd.f32 %v767_v28, %v621_v27 }
 0x4bd   :  { %v2663_v30 = vpop.f32.mrf.mxu1 }
 0x4be   :  { %v2413_v31 = vmul.f32 -1.442695, %v771_v29 }
 0x4c0   :  { %2896 = vpow2.f32 %v2413_v31 }
 0x4c3   :  { %v941_v32 = vpop.f32.mrf.mxu1 }
 0x4c4   :  { %v945_v50 = vadd.f32 %v941_v32, %v874_v49 }
 0x4c5   :  { %v2685_v33 = vpop.f32.mrf.mxu1 }
 0x4cd   :  { %v2897_v34 = vpop.eup %2896 }
 0x4ce   :  { %v775_v35 = vadd.f32 1.0, %v2897_v34 }
 0x4d0   :  { %2898 = vrcp.f32 %v775_v35 }
 0x4dd   :  { %v2899_v36 = vpop.eup %2898 }
 0x4de   :  { %v778_v37 = vmul.f32 2.0, %v2899_v36 }
 0x4e0   :  { %v2414_v38 = vadd.f32 -1.0, %v778_v37 }
 0x4e2   :  { %v780_v39 = vsel %vm3314_vm5, %v2414_v38, %v2899_v36 }
 0x4e3   :  { %783 = vrot.lane.b32.xlu0 %v780_v39, %s3110_s6  ;;  %v781_v42 = vmul.f32 %v780_v39, %v3322_v13 }
 0x555   :  { %v784_v40 = vpop.permute.xlu0 %783 }
 0x556   :  { %v786_v41 = vmul.f32 %v784_v40, %v780_v39 }
 0x558   :  { %788 = vrot.lane.b32.xlu1 %v786_v41, %s3111_s15 }
 0x5ca   :  { %v789_v43 = vpop.permute.xlu1 %788 }
 0x5cb   :  { %v3366_v44 = vadd.f32 %v789_v43, %v781_v42 }
 0x5cd   :  { %2900 = vtanh.f32 %v3366_v44 }
 0x5ce   :  { %2902 = vtanh.f32 %v945_v50 }
 0x5da   :  { %v2901_v45 = vpop.eup %2900 }
 0x5db   :  { %794 = vrot.lane.b32.xlu0 %v2901_v45, %s3110_s6  ;;  %v2903_v52 = vpop.eup %2902 }
 0x64d   :  { %v795_v46 = vpop.permute.xlu0 %794 }
 0x64e   :  { %v797_v48 = vmul.f32 %v795_v46, %v780_v39 }
 0x650   :  { %799 = vrot.lane.b32.xlu1 %v797_v48, %s3111_s15 }
 0x6c2   :  { %v800_v51 = vpop.permute.xlu1 %799 }
 0x6c3   :  { %2673 = vmatmul.mubr.msk.f32.vlgmr.msra.gmra.mxu0 %vm270_vm2, %v800_v51 }
 0x6c4   :  { %2687 = vmatpush3.msra.mxu0 %v3251_v14  ;;  %2694 = vmatprep.mubr.msk.f32.mxu0 %vm3109_vm0, %v3108_v0 }
 0x6c5   :  { %2688 = vmatprep.subr.mxu0 %v3108_v0 }
 0x6c6   :  { %2689 = vmatpush3.msra.mxu0 %v3254_v16 }
 0x6c7   :  { %2690 = vmatprep.subr.mxu0 %v3108_v0 }
 0x6c8   :  { %2691 = vmatpush3.msra.mxu0 %v3259_v18 }
 0x6c9   :  { %2692 = vmatprep.subr.mxu0 %v3108_v0 }
 0x6ca   :  { %2693 = vmatpush3.msra.mxu0 %v3264_v21 }
 0x6cb   :  { %2695 = vmatmul.mubr.msk.f32.vlgmr.msra.gmra.mxu0 %vm270_vm2, %v2903_v52  ;;  %2708 = vmatprep.subr.mxu0 %v3108_v0 }
 0x6cc   :  { %2709 = vmatpush3.msra.mxu0 %v3219_v9  ;;  %2716 = vmatprep.mubr.msk.f32.mxu0 %vm3109_vm0, %v3108_v0 }
 0x6cd   :  { %2710 = vmatprep.subr.mxu0 %v3108_v0 }
 0x6ce   :  { %2711 = vmatpush3.msra.mxu0 %v3224_v10 }
 0x6cf   :  { %2712 = vmatprep.subr.mxu0 %v3108_v0 }
 0x6d0   :  { %2713 = vmatpush3.msra.mxu0 %v3230_v11 }
 0x6d1   :  { %2714 = vmatprep.subr.mxu0 %v3108_v0 }
 0x6d2   :  { %2715 = vmatpush3.msra.mxu0 %v3234_v12 }
 0x6d3   :  { %2717 = vmatmul.mubr.msk.f32.vlgmr.msra.gmra.mxu0 %vm270_vm2, %v2903_v52  ;;  %2730 = vmatprep.subr.mxu0 %v3108_v0 }
 0x6d4   :  { %2731 = vmatpush3.msra.mxu0 %v3202_v2  ;;  %2738 = vmatprep.mubr.msk.f32.mxu0 %vm3109_vm0, %v3108_v0 }
 0x6d5   :  { %2732 = vmatprep.subr.mxu0 %v3108_v0 }
 0x6d6   :  { %2733 = vmatpush3.msra.mxu0 %v3205_v4 }
 0x6d7   :  { %2734 = vmatprep.subr.mxu0 %v3108_v0 }
 0x6d8   :  { %2735 = vmatpush3.msra.mxu0 %v3209_v7 }
 0x6d9   :  { %2736 = vmatprep.subr.mxu0 %v3108_v0 }
 0x6da   :  { %2737 = vmatpush3.msra.mxu0 %v3214_v8 }
 0x6db   :  { %2752 = vmatprep.subr.mxu0 %v3108_v0 }
 0x783   :  { %v869_v53 = vpop.f32.mrf.mxu0 }
 0x784   :  { %v870_v55 = vadd.f32 %v3311_v47, %v869_v53 }
 0x785   :  { %v2674_v54 = vpop.f32.mrf.mxu0 }
 0x786   :  { %v1372_v54 = vld [vmem:[#allocation2 + $0x20] sm:$0xff] }
 0x78b   :  { %v1016_v56 = vpop.f32.mrf.mxu0 }
 0x78c   :  { %v1020_v57 = vadd.f32 %v1016_v56, %v870_v55 }
 0x78d   :  { %v2696_v58 = vpop.f32.mrf.mxu0 }
 0x78e   :  { %v2418_v59 = vmul.f32 -1.442695, %v1020_v57 }
 0x790   :  { %2904 = vpow2.f32 %v2418_v59 }
 0x793   :  { %v1190_v60 = vpop.f32.mrf.mxu0 }
 0x794   :  { %v1194_v27 = vadd.f32 %v1190_v60, %v1123_v26 }
 0x795   :  { %v2718_v62 = vpop.f32.mrf.mxu0 }
 0x79d   :  { %v2905_v63 = vpop.eup %2904 }
 0x79e   :  { %v1024_v1 = vadd.f32 1.0, %v2905_v63 }
 0x7a0   :  { %2906 = vrcp.f32 %v1024_v1 }
 0x7ad   :  { %v2907_v3 = vpop.eup %2906 }
 0x7ae   :  { %v1027_v5 = vmul.f32 2.0, %v2907_v3 }
 0x7b0   :  { %v2419_v6 = vadd.f32 -1.0, %v1027_v5 }
 0x7b2   :  { %v1029_v13 = vsel %vm3314_vm5, %v2419_v6, %v2907_v3 }
 0x7b3   :  { %1032 = vrot.lane.b32.xlu0 %v1029_v13, %s3110_s6  ;;  %v1030_v19 = vmul.f32 %v1029_v13, %v3366_v44 }
 0x825   :  { %v1033_v15 = vpop.permute.xlu0 %1032 }
 0x826   :  { %v1035_v17 = vmul.f32 %v1033_v15, %v1029_v13 }
 0x828   :  { %1037 = vrot.lane.b32.xlu1 %v1035_v17, %s3111_s15 }
 0x89a   :  { %v1038_v20 = vpop.permute.xlu1 %1037 }
 0x89b   :  { %v3410_v22 = vadd.f32 %v1038_v20, %v1030_v19 }
 0x89d   :  { %2908 = vtanh.f32 %v3410_v22 }
 0x89e   :  { %2910 = vtanh.f32 %v1194_v27 }
 0x8aa   :  { %v2909_v23 = vpop.eup %2908 }
 0x8ab   :  { %1043 = vrot.lane.b32.xlu0 %v2909_v23, %s3110_s6  ;;  %v2911_v29 = vpop.eup %2910 }
 0x91d   :  { %v1044_v24 = vpop.permute.xlu0 %1043 }
 0x91e   :  { %v1046_v25 = vmul.f32 %v1044_v24, %v1029_v13 }
 0x920   :  { %1048 = vrot.lane.b32.xlu1 %v1046_v25, %s3111_s15 }
 0x992   :  { %v1049_v28 = vpop.permute.xlu1 %1048 }
 0x993   :  { %2706 = vmatmul.mubr.msk.f32.vlgmr.msra.gmra.mxu1 %vm270_vm2, %v1049_v28 }
 0x994   :  { %2720 = vmatpush3.msra.mxu1 %v3251_v14  ;;  %2727 = vmatprep.mubr.msk.f32.mxu1 %vm3109_vm0, %v3108_v0 }
 0x995   :  { %2721 = vmatprep.subr.mxu1 %v3108_v0 }
 0x996   :  { %2722 = vmatpush3.msra.mxu1 %v3254_v16 }
 0x997   :  { %2723 = vmatprep.subr.mxu1 %v3108_v0 }
 0x998   :  { %2724 = vmatpush3.msra.mxu1 %v3259_v18 }
 0x999   :  { %2725 = vmatprep.subr.mxu1 %v3108_v0 }
 0x99a   :  { %2726 = vmatpush3.msra.mxu1 %v3264_v21 }
 0x99b   :  { %2728 = vmatmul.mubr.msk.f32.vlgmr.msra.gmra.mxu1 %vm270_vm2, %v2911_v29  ;;  %2741 = vmatprep.subr.mxu1 %v3108_v0 }
 0x99c   :  { %2742 = vmatpush3.msra.mxu1 %v3219_v9  ;;  %2749 = vmatprep.mubr.msk.f32.mxu1 %vm3109_vm0, %v3108_v0 }
 0x99d   :  { %2743 = vmatprep.subr.mxu1 %v3108_v0 }
 0x99e   :  { %2744 = vmatpush3.msra.mxu1 %v3224_v10 }
 0x99f   :  { %2745 = vmatprep.subr.mxu1 %v3108_v0 }
 0x9a0   :  { %2746 = vmatpush3.msra.mxu1 %v3230_v11 }
 0x9a1   :  { %2747 = vmatprep.subr.mxu1 %v3108_v0 }
 0x9a2   :  { %2748 = vmatpush3.msra.mxu1 %v3234_v12 }
 0x9a3   :  { %2750 = vmatmul.mubr.msk.f32.vlgmr.msra.gmra.mxu1 %vm270_vm2, %v2911_v29  ;;  %2763 = vmatprep.subr.mxu1 %v3108_v0 }
 0x9a4   :  { %2764 = vmatpush3.msra.mxu1 %v3202_v2  ;;  %2771 = vmatprep.mubr.msk.f32.mxu1 %vm3109_vm0, %v3108_v0 }
 0x9a5   :  { %2765 = vmatprep.subr.mxu1 %v3108_v0 }
 0x9a6   :  { %2766 = vmatpush3.msra.mxu1 %v3205_v4 }
 0x9a7   :  { %2767 = vmatprep.subr.mxu1 %v3108_v0 }
 0x9a8   :  { %2768 = vmatpush3.msra.mxu1 %v3209_v7 }
 0x9a9   :  { %2769 = vmatprep.subr.mxu1 %v3108_v0 }
 0x9aa   :  { %2770 = vmatpush3.msra.mxu1 %v3214_v8 }
 0x9ab   :  { %2785 = vmatprep.subr.mxu1 %v3108_v0 }
 0xa53   :  { %v1118_v30 = vpop.f32.mrf.mxu1 }
 0xa54   :  { %v1119_v32 = vadd.f32 %v3311_v47, %v1118_v30 }
 0xa55   :  { %v2707_v31 = vpop.f32.mrf.mxu1 }
 0xa56   :  { %v1621_v31 = vld [vmem:[#allocation2 + $0x28] sm:$0xff] }
 0xa5b   :  { %v1265_v33 = vpop.f32.mrf.mxu1 }
 0xa5c   :  { %v1269_v34 = vadd.f32 %v1265_v33, %v1119_v32 }
 0xa5d   :  { %v2729_v35 = vpop.f32.mrf.mxu1 }
 0xa5e   :  { %v2423_v36 = vmul.f32 -1.442695, %v1269_v34 }
 0xa60   :  { %2912 = vpow2.f32 %v2423_v36 }
 0xa63   :  { %v1439_v37 = vpop.f32.mrf.mxu1 }
 0xa64   :  { %v1443_v55 = vadd.f32 %v1439_v37, %v1372_v54 }
 0xa65   :  { %v2751_v38 = vpop.f32.mrf.mxu1 }
 0xa6d   :  { %v2913_v39 = vpop.eup %2912 }
 0xa6e   :  { %v1273_v40 = vadd.f32 1.0, %v2913_v39 }
 0xa70   :  { %2914 = vrcp.f32 %v1273_v40 }
 0xa7d   :  { %v2915_v41 = vpop.eup %2914 }
 0xa7e   :  { %v1276_v42 = vmul.f32 2.0, %v2915_v41 }
 0xa80   :  { %v2424_v43 = vadd.f32 -1.0, %v1276_v42 }
 0xa82   :  { %v1278_v44 = vsel %vm3314_vm5, %v2424_v43, %v2915_v41 }
 0xa83   :  { %1281 = vrot.lane.b32.xlu0 %v1278_v44, %s3110_s6  ;;  %v1279_v48 = vmul.f32 %v1278_v44, %v3410_v22 }
 0xaf5   :  { %v1282_v45 = vpop.permute.xlu0 %1281 }
 0xaf6   :  { %v1284_v46 = vmul.f32 %v1282_v45, %v1278_v44 }
 0xaf8   :  { %1286 = vrot.lane.b32.xlu1 %v1284_v46, %s3111_s15 }
 0xb6a   :  { %v1287_v49 = vpop.permute.xlu1 %1286 }
 0xb6b   :  { %v3454_v50 = vadd.f32 %v1287_v49, %v1279_v48 }
 0xb6d   :  { %2916 = vtanh.f32 %v3454_v50 }
 0xb6e   :  { %2918 = vtanh.f32 %v1443_v55  ;;  %v1870_v55 = vld [vmem:[#allocation2 + $0x30] sm:$0xff] }
 0xb7a   :  { %v2917_v51 = vpop.eup %2916 }
 0xb7b   :  { %1292 = vrot.lane.b32.xlu0 %v2917_v51, %s3110_s6  ;;  %v2919_v57 = vpop.eup %2918 }
 0xbed   :  { %v1293_v52 = vpop.permute.xlu0 %1292 }
 0xbee   :  { %v1295_v53 = vmul.f32 %v1293_v52, %v1278_v44 }
 0xbf0   :  { %1297 = vrot.lane.b32.xlu1 %v1295_v53, %s3111_s15 }
 0xc62   :  { %v1298_v56 = vpop.permute.xlu1 %1297 }
 0xc63   :  { %2739 = vmatmul.mubr.msk.f32.vlgmr.msra.gmra.mxu0 %vm270_vm2, %v1298_v56 }
 0xc64   :  { %2753 = vmatpush3.msra.mxu0 %v3251_v14  ;;  %2760 = vmatprep.mubr.msk.f32.mxu0 %vm3109_vm0, %v3108_v0 }
 0xc65   :  { %2754 = vmatprep.subr.mxu0 %v3108_v0 }
 0xc66   :  { %2755 = vmatpush3.msra.mxu0 %v3254_v16 }
 0xc67   :  { %2756 = vmatprep.subr.mxu0 %v3108_v0 }
 0xc68   :  { %2757 = vmatpush3.msra.mxu0 %v3259_v18 }
 0xc69   :  { %2758 = vmatprep.subr.mxu0 %v3108_v0 }
 0xc6a   :  { %2759 = vmatpush3.msra.mxu0 %v3264_v21 }
 0xc6b   :  { %2761 = vmatmul.mubr.msk.f32.vlgmr.msra.gmra.mxu0 %vm270_vm2, %v2919_v57  ;;  %2774 = vmatprep.subr.mxu0 %v3108_v0 }
 0xc6c   :  { %2775 = vmatpush3.msra.mxu0 %v3219_v9  ;;  %2782 = vmatprep.mubr.msk.f32.mxu0 %vm3109_vm0, %v3108_v0 }
 0xc6d   :  { %2776 = vmatprep.subr.mxu0 %v3108_v0 }
 0xc6e   :  { %2777 = vmatpush3.msra.mxu0 %v3224_v10 }
 0xc6f   :  { %2778 = vmatprep.subr.mxu0 %v3108_v0 }
 0xc70   :  { %2779 = vmatpush3.msra.mxu0 %v3230_v11 }
 0xc71   :  { %2780 = vmatprep.subr.mxu0 %v3108_v0 }
 0xc72   :  { %2781 = vmatpush3.msra.mxu0 %v3234_v12 }
 0xc73   :  { %2783 = vmatmul.mubr.msk.f32.vlgmr.msra.gmra.mxu0 %vm270_vm2, %v2919_v57  ;;  %2796 = vmatprep.subr.mxu0 %v3108_v0 }
 0xc74   :  { %2797 = vmatpush3.msra.mxu0 %v3202_v2  ;;  %2804 = vmatprep.mubr.msk.f32.mxu0 %vm3109_vm0, %v3108_v0 }
 0xc75   :  { %2798 = vmatprep.subr.mxu0 %v3108_v0 }
 0xc76   :  { %2799 = vmatpush3.msra.mxu0 %v3205_v4 }
 0xc77   :  { %2800 = vmatprep.subr.mxu0 %v3108_v0 }
 0xc78   :  { %2801 = vmatpush3.msra.mxu0 %v3209_v7 }
 0xc79   :  { %2802 = vmatprep.subr.mxu0 %v3108_v0 }
 0xc7a   :  { %2803 = vmatpush3.msra.mxu0 %v3214_v8 }
 0xc7b   :  { %2818 = vmatprep.subr.mxu0 %v3108_v0 }
 0xd23   :  { %v1367_v58 = vpop.f32.mrf.mxu0 }
 0xd24   :  { %v1368_v60 = vadd.f32 %v3311_v47, %v1367_v58 }
 0xd25   :  { %v2740_v59 = vpop.f32.mrf.mxu0 }
 0xd2b   :  { %v1514_v62 = vpop.f32.mrf.mxu0 }
 0xd2c   :  { %v1518_v63 = vadd.f32 %v1514_v62, %v1368_v60 }
 0xd2d   :  { %v2762_v1 = vpop.f32.mrf.mxu0 }
 0xd2e   :  { %v2428_v3 = vmul.f32 -1.442695, %v1518_v63 }
 0xd30   :  { %2920 = vpow2.f32 %v2428_v3 }
 0xd33   :  { %v1688_v5 = vpop.f32.mrf.mxu0 }
 0xd34   :  { %v1692_v32 = vadd.f32 %v1688_v5, %v1621_v31 }
 0xd35   :  { %v2784_v6 = vpop.f32.mrf.mxu0 }
 0xd3d   :  { %v2921_v13 = vpop.eup %2920 }
 0xd3e   :  { %v1522_v15 = vadd.f32 1.0, %v2921_v13 }
 0xd40   :  { %2922 = vrcp.f32 %v1522_v15 }
 0xd4d   :  { %v2923_v17 = vpop.eup %2922 }
 0xd4e   :  { %v1525_v19 = vmul.f32 2.0, %v2923_v17 }
 0xd50   :  { %v2429_v20 = vadd.f32 -1.0, %v1525_v19 }
 0xd52   :  { %v1527_v22 = vsel %vm3314_vm5, %v2429_v20, %v2923_v17 }
 0xd53   :  { %1530 = vrot.lane.b32.xlu0 %v1527_v22, %s3110_s6  ;;  %v1528_v25 = vmul.f32 %v1527_v22, %v3454_v50 }
 0xdc5   :  { %v1531_v23 = vpop.permute.xlu0 %1530 }
 0xdc6   :  { %v1533_v24 = vmul.f32 %v1531_v23, %v1527_v22 }
 0xdc8   :  { %1535 = vrot.lane.b32.xlu1 %v1533_v24, %s3111_s15 }
 0xe3a   :  { %v1536_v26 = vpop.permute.xlu1 %1535 }
 0xe3b   :  { %v3498_v27 = vadd.f32 %v1536_v26, %v1528_v25 }
 0xe3d   :  { %2924 = vtanh.f32 %v3498_v27 }
 0xe3e   :  { %2926 = vtanh.f32 %v1692_v32 }
 0xe4a   :  { %v2925_v28 = vpop.eup %2924 }
 0xe4b   :  { %1541 = vrot.lane.b32.xlu0 %v2925_v28, %s3110_s6  ;;  %v2927_v34 = vpop.eup %2926  ;;  %v2119_v28 = vld [vmem:[#allocation2 + $0x38] sm:$0xff] }
 0xebd   :  { %v1542_v29 = vpop.permute.xlu0 %1541 }
 0xebe   :  { %v1544_v30 = vmul.f32 %v1542_v29, %v1527_v22 }
 0xec0   :  { %1546 = vrot.lane.b32.xlu1 %v1544_v30, %s3111_s15 }
 0xf32   :  { %v1547_v33 = vpop.permute.xlu1 %1546 }
 0xf33   :  { %2772 = vmatmul.mubr.msk.f32.vlgmr.msra.gmra.mxu1 %vm270_vm2, %v1547_v33 }
 0xf34   :  { %2786 = vmatpush3.msra.mxu1 %v3251_v14  ;;  %2793 = vmatprep.mubr.msk.f32.mxu1 %vm3109_vm0, %v3108_v0 }
 0xf35   :  { %2787 = vmatprep.subr.mxu1 %v3108_v0 }
 0xf36   :  { %2788 = vmatpush3.msra.mxu1 %v3254_v16 }
 0xf37   :  { %2789 = vmatprep.subr.mxu1 %v3108_v0 }
 0xf38   :  { %2790 = vmatpush3.msra.mxu1 %v3259_v18 }
 0xf39   :  { %2791 = vmatprep.subr.mxu1 %v3108_v0 }
 0xf3a   :  { %2792 = vmatpush3.msra.mxu1 %v3264_v21 }
 0xf3b   :  { %2794 = vmatmul.mubr.msk.f32.vlgmr.msra.gmra.mxu1 %vm270_vm2, %v2927_v34  ;;  %2807 = vmatprep.subr.mxu1 %v3108_v0 }
 0xf3c   :  { %2808 = vmatpush3.msra.mxu1 %v3219_v9  ;;  %2815 = vmatprep.mubr.msk.f32.mxu1 %vm3109_vm0, %v3108_v0 }
 0xf3d   :  { %2809 = vmatprep.subr.mxu1 %v3108_v0 }
 0xf3e   :  { %2810 = vmatpush3.msra.mxu1 %v3224_v10 }
 0xf3f   :  { %2811 = vmatprep.subr.mxu1 %v3108_v0 }
 0xf40   :  { %2812 = vmatpush3.msra.mxu1 %v3230_v11 }
 0xf41   :  { %2813 = vmatprep.subr.mxu1 %v3108_v0 }
 0xf42   :  { %2814 = vmatpush3.msra.mxu1 %v3234_v12 }
 0xf43   :  { %2816 = vmatmul.mubr.msk.f32.vlgmr.msra.gmra.mxu1 %vm270_vm2, %v2927_v34  ;;  %2829 = vmatprep.subr.mxu1 %v3108_v0 }
 0xf44   :  { %2830 = vmatpush3.msra.mxu1 %v3202_v2  ;;  %2837 = vmatprep.mubr.msk.f32.mxu1 %vm3109_vm0, %v3108_v0 }
 0xf45   :  { %2831 = vmatprep.subr.mxu1 %v3108_v0 }
 0xf46   :  { %2832 = vmatpush3.msra.mxu1 %v3205_v4 }
 0xf47   :  { %2833 = vmatprep.subr.mxu1 %v3108_v0 }
 0xf48   :  { %2834 = vmatpush3.msra.mxu1 %v3209_v7 }
 0xf49   :  { %2835 = vmatprep.subr.mxu1 %v3108_v0 }
 0xf4a   :  { %2836 = vmatpush3.msra.mxu1 %v3214_v8 }
 0xf4b   :  { %2851 = vmatprep.subr.mxu1 %v3108_v0 }
 0xff3   :  { %v1616_v35 = vpop.f32.mrf.mxu1 }
 0xff4   :  { %v1617_v2 = vadd.f32 %v3311_v47, %v1616_v35 }
 0xff5   :  { %v2773_v36 = vpop.f32.mrf.mxu1 }
 0xffb   :  { %v1763_v37 = vpop.f32.mrf.mxu1 }
 0xffc   :  { %v1767_v38 = vadd.f32 %v1763_v37, %v1617_v2 }
 0xffd   :  { %v2795_v39 = vpop.f32.mrf.mxu1 }
 0xffe   :  { %v2433_v40 = vmul.f32 -1.442695, %v1767_v38 }
0x1000   :  { %2928 = vpow2.f32 %v2433_v40 }
0x1003   :  { %v1937_v4 = vpop.f32.mrf.mxu1 }
0x1004   :  { %v1941_v56 = vadd.f32 %v1937_v4, %v1870_v55 }
0x1005   :  { %v2817_v41 = vpop.f32.mrf.mxu1 }
0x100d   :  { %v2929_v42 = vpop.eup %2928 }
0x100e   :  { %v1771_v43 = vadd.f32 1.0, %v2929_v42 }
0x1010   :  { %2930 = vrcp.f32 %v1771_v43  ;;  %v2295_v43 = vld [vmem:[#allocation12 + $0x18] sm:$0xff] }
0x101d   :  { %v2931_v7 = vpop.eup %2930 }
0x101e   :  { %v1774_v44 = vmul.f32 2.0, %v2931_v7 }
0x1020   :  { %v2434_v45 = vadd.f32 -1.0, %v1774_v44  ;;  %v2293_v44 = vld [vmem:[#allocation12 + $0x8] sm:$0xff] }
0x1022   :  { %v1776_v8 = vsel %vm3314_vm5, %v2434_v45, %v2931_v7  ;;  %v2294_v7 = vld [vmem:[#allocation12 + $0x10] sm:$0xff] }
0x1023   :  { %1779 = vrot.lane.b32.xlu0 %v1776_v8, %s3110_s6  ;;  %v1777_v49 = vmul.f32 %v1776_v8, %v3498_v27 }
0x1095   :  { %v1780_v46 = vpop.permute.xlu0 %1779 }
0x1096   :  { %v1782_v48 = vmul.f32 %v1780_v46, %v1776_v8 }
0x1098   :  { %1784 = vrot.lane.b32.xlu1 %v1782_v48, %s3111_s15 }
0x110a   :  { %v1785_v50 = vpop.permute.xlu1 %1784 }
0x110b   :  { %v1787_v51 = vadd.f32 %v1785_v50, %v1777_v49  ;;  %v2445_v49 = vld [vmem:[%s3612_s8] ss:$0 sm:$0xff] }
0x110d   :  { %2932 = vtanh.f32 %v1787_v51 }
0x110e   :  { %2934 = vtanh.f32 %v1941_v56 }
0x111a   :  { %v2933_v52 = vpop.eup %2932 }
0x111b   :  { %1790 = vrot.lane.b32.xlu0 %v2933_v52, %s3110_s6  ;;  %v2935_v58 = vpop.eup %2934 }
0x118d   :  { %v1791_v53 = vpop.permute.xlu0 %1790 }
0x118e   :  { %v1793_v54 = vmul.f32 %v1791_v53, %v1776_v8 }
0x1190   :  { %1795 = vrot.lane.b32.xlu1 %v1793_v54, %s3111_s15 }
0x1202   :  { %v1796_v57 = vpop.permute.xlu1 %1795 }
0x1203   :  { %2805 = vmatmul.mubr.msk.f32.vlgmr.msra.gmra.mxu0 %vm270_vm2, %v1796_v57 }
0x1204   :  { %2819 = vmatpush3.msra.mxu0 %v3251_v14  ;;  %2826 = vmatprep.mubr.msk.f32.mxu0 %vm3109_vm0, %v3108_v0 }
0x1205   :  { %2820 = vmatprep.subr.mxu0 %v3108_v0 }
0x1206   :  { %2821 = vmatpush3.msra.mxu0 %v3254_v16 }
0x1207   :  { %2822 = vmatprep.subr.mxu0 %v3108_v0 }
0x1208   :  { %2823 = vmatpush3.msra.mxu0 %v3259_v18 }
0x1209   :  { %2824 = vmatprep.subr.mxu0 %v3108_v0 }
0x120a   :  { %2825 = vmatpush3.msra.mxu0 %v3264_v21 }
0x120b   :  { %2827 = vmatmul.mubr.msk.f32.vlgmr.msra.gmra.mxu0 %vm270_vm2, %v2935_v58  ;;  %2840 = vmatprep.subr.mxu0 %v3108_v0 }
0x120c   :  { %2841 = vmatpush3.msra.mxu0 %v3219_v9  ;;  %2848 = vmatprep.mubr.msk.f32.mxu0 %vm3109_vm0, %v3108_v0 }
0x120d   :  { %2842 = vmatprep.subr.mxu0 %v3108_v0 }
0x120e   :  { %2843 = vmatpush3.msra.mxu0 %v3224_v10 }
0x120f   :  { %2844 = vmatprep.subr.mxu0 %v3108_v0 }
0x1210   :  { %2845 = vmatpush3.msra.mxu0 %v3230_v11 }
0x1211   :  { %2846 = vmatprep.subr.mxu0 %v3108_v0 }
0x1212   :  { %2847 = vmatpush3.msra.mxu0 %v3234_v12 }
0x1213   :  { %2849 = vmatmul.mubr.msk.f32.vlgmr.msra.gmra.mxu0 %vm270_vm2, %v2935_v58  ;;  %2862 = vmatprep.subr.mxu0 %v3108_v0 }
0x1214   :  { %2870 = vmatprep.mubr.msk.f32.mxu0 %vm3109_vm0, %v3108_v0  ;;  %2863 = vmatpush3.msra.mxu0 %v2295_v43 }
0x1215   :  { %2864 = vmatprep.subr.mxu0 %v3108_v0 }
0x1216   :  { %2865 = vmatpush3.msra.mxu0 %v2294_v7 }
0x1217   :  { %2866 = vmatprep.subr.mxu0 %v3108_v0 }
0x1218   :  { %2867 = vmatpush3.msra.mxu0 %v2293_v44 }
0x1219   :  { %2868 = vmatprep.subr.mxu0 %v3108_v0 }
0x121a   :  { %2869 = vmatpush3.msra.mxu0 %v2292_v61 }
0x12c3   :  { %v1865_v9 = vpop.f32.mrf.mxu0 }
0x12c4   :  { %v1866_v60 = vadd.f32 %v3311_v47, %v1865_v9 }
0x12c5   :  { %v2806_v59 = vpop.f32.mrf.mxu0 }
0x12cb   :  { %v2012_v10 = vpop.f32.mrf.mxu0 }
0x12cc   :  { %v2016_v62 = vadd.f32 %v2012_v10, %v1866_v60 }
0x12cd   :  { %v2828_v63 = vpop.f32.mrf.mxu0 }
0x12ce   :  { %v2438_v1 = vmul.f32 -1.442695, %v2016_v62 }
0x12d0   :  { %2936 = vpow2.f32 %v2438_v1 }
0x12d3   :  { %v2186_v11 = vpop.f32.mrf.mxu0 }
0x12d4   :  { %v2190_v29 = vadd.f32 %v2186_v11, %v2119_v28 }
0x12d5   :  { %v2850_v3 = vpop.f32.mrf.mxu0 }
0x12dd   :  { %v2937_v5 = vpop.eup %2936 }
0x12de   :  { %v2020_v12 = vadd.f32 1.0, %v2937_v5 }
0x12e0   :  { %2938 = vrcp.f32 %v2020_v12 }
0x12ed   :  { %v2939_v6 = vpop.eup %2938 }
0x12ee   :  { %v2023_v13 = vmul.f32 2.0, %v2939_v6 }
0x12f0   :  { %v2439_v15 = vadd.f32 -1.0, %v2023_v13 }
0x12f2   :  { %v2025_v17 = vsel %vm3314_vm5, %v2439_v15, %v2939_v6 }
0x12f3   :  { %2028 = vrot.lane.b32.xlu0 %v2025_v17, %s3110_s6  ;;  %v2026_v22 = vmul.f32 %v2025_v17, %v1787_v51 }
0x1365   :  { %v2029_v19 = vpop.permute.xlu0 %2028 }
0x1366   :  { %v2031_v20 = vmul.f32 %v2029_v19, %v2025_v17 }
0x1368   :  { %2033 = vrot.lane.b32.xlu1 %v2031_v20, %s3111_s15 }
0x13da   :  { %v2034_v23 = vpop.permute.xlu1 %2033 }
0x13db   :  { %v2036_v24 = vadd.f32 %v2034_v23, %v2026_v22 }
0x13dd   :  { %2940 = vtanh.f32 %v2036_v24 }
0x13de   :  { %2942 = vtanh.f32 %v2190_v29 }
0x13ea   :  { %v2941_v25 = vpop.eup %2940 }
0x13eb   :  { %2039 = vrot.lane.b32.xlu0 %v2941_v25, %s3110_s6  ;;  %v2943_v31 = vpop.eup %2942 }
0x145d   :  { %v2040_v26 = vpop.permute.xlu0 %2039 }
0x145e   :  { %v2042_v27 = vmul.f32 %v2040_v26, %v2025_v17 }
0x1460   :  { %2044 = vrot.lane.b32.xlu1 %v2042_v27, %s3111_s15 }
0x14d2   :  { %v2045_v30 = vpop.permute.xlu1 %2044 }
0x14d3   :  { %2838 = vmatmul.mubr.msk.f32.vlgmr.msra.gmra.mxu1 %vm270_vm2, %v2045_v30 }
0x14d4   :  { %2852 = vmatpush3.msra.mxu1 %v3251_v14  ;;  %2859 = vmatprep.mubr.msk.f32.mxu1 %vm3109_vm0, %v3108_v0 }
0x14d5   :  { %2853 = vmatprep.subr.mxu1 %v3108_v0 }
0x14d6   :  { %2854 = vmatpush3.msra.mxu1 %v3254_v16 }
0x14d7   :  { %2855 = vmatprep.subr.mxu1 %v3108_v0 }
0x14d8   :  { %2856 = vmatpush3.msra.mxu1 %v3259_v18 }
0x14d9   :  { %2857 = vmatprep.subr.mxu1 %v3108_v0 }
0x14da   :  { %2858 = vmatpush3.msra.mxu1 %v3264_v21 }
0x14db   :  { %2860 = vmatmul.mubr.msk.f32.vlgmr.msra.gmra.mxu1 %vm270_vm2, %v2943_v31 }
0x1593   :  { %v2114_v32 = vpop.f32.mrf.mxu1 }
0x1594   :  { %v2115_v33 = vadd.f32 %v3311_v47, %v2114_v32 }
0x1595   :  { %v2839_v14 = vpop.f32.mrf.mxu1 }
0x159b   :  { %v2261_v34 = vpop.f32.mrf.mxu1 }
0x159c   :  { %v2265_v35 = vadd.f32 %v2261_v34, %v2115_v33 }
0x159d   :  { %v2861_v36 = vpop.f32.mrf.mxu1 }
0x159e   :  { %v2443_v2 = vmul.f32 -1.442695, %v2265_v35 }
0x15a0   :  { %2944 = vpow2.f32 %v2443_v2 }
0x15ad   :  { %v2945_v16 = vpop.eup %2944 }
0x15ae   :  { %v2269_v37 = vadd.f32 1.0, %v2945_v16 }
0x15b0   :  { %2946 = vrcp.f32 %v2269_v37 }
0x15bd   :  { %v2947_v18 = vpop.eup %2946 }
0x15be   :  { %v2272_v38 = vmul.f32 2.0, %v2947_v18 }
0x15c0   :  { %v2444_v39 = vadd.f32 -1.0, %v2272_v38 }
0x15c2   :  { %v2274_v21 = vsel %vm3314_vm5, %v2444_v39, %v2947_v18 }
0x15c3   :  { %2277 = vrot.lane.b32.xlu0 %v2274_v21, %s3110_s6  ;;  %v2275_v47 = vmul.f32 %v2274_v21, %v2036_v24 }
0x1635   :  { %v2278_v40 = vpop.permute.xlu0 %2277 }
0x1636   :  { %v2280_v4 = vmul.f32 %v2278_v40, %v2274_v21 }
0x1638   :  { %2282 = vrot.lane.b32.xlu1 %v2280_v4, %s3111_s15 }
0x16aa   :  { %v2283_v41 = vpop.permute.xlu1 %2282 }
0x16ab   :  { %v2285_v42 = vadd.f32 %v2283_v41, %v2275_v47 }
0x16ad   :  { %2948 = vtanh.f32 %v2285_v42 }
0x16ba   :  { %v2949_v45 = vpop.eup %2948 }
0x16bb   :  { %2288 = vrot.lane.b32.xlu0 %v2949_v45, %s3110_s6 }
0x172d   :  { %v2289_v8 = vpop.permute.xlu0 %2288 }
0x172e   :  { %v2291_v46 = vmul.f32 %v2289_v8, %v2274_v21 }
0x1730   :  { %2304 = vrot.lane.b32.xlu1 %v2291_v46, %s3111_s15 }
0x17a2   :  { %v2305_v48 = vpop.permute.xlu1 %2304 }
0x17a3   :  { %2871 = vmatmul.mubr.msk.f32.vlgmr.msra.gmra.mxu0 %vm270_vm2, %v2305_v48 }
0x1863   :  { %v2374_v50 = vpop.f32.mrf.mxu0 }
0x1864   :  { %v2375_v51 = vadd.f32 %v2445_v49, %v2374_v50 }
0x1865   :  { %v2872_v0 = vpop.f32.mrf.mxu0 }
0x1866   :  { %2378 = vst [vmem:[#allocation14] sm:$0xff] %v2375_v51 }
0x1867   :  { %3081 = shalt.err (!%p3078_p6)
}
0x1868   :  { %2388 = dma.vmem_to_hbm [thread:$0]  %s2386_s21, 128, %s3613_s9, [#allocation5]  }
0x1869   :  { %3098 = dma.done.wait [#allocation5], 128  }
0x186a   :  { %3099 = vsyncadd [#allocation5], 4294967168 }
0x186b   :  { %2392 = vsyncpa [#allocation4], 1 }
0x186c   :  { %2393 = vsyncpa [#allocation7], 1 }
0x186d   :  { %2394 = vsyncpa [#allocation10], 1 }
0x186e   :  { %2395 = vsyncpa [#allocation13], 1 }
0x186f   :  { %2396 = vsyncpa [#allocation5], 1 }

</bundles_post_ra>
